<compile_context>
chip_gen: v7x
topology: tpu7x:2x2x1
jax: 0.10.0
libtpu: 0.0.40
codegen_flags: <defaults>
</compile_context>

<pallas_src>
import functools
import math

import jax
import jax.numpy as jnp
from jax import lax
from jax.experimental import pallas as pl
from jax.experimental.pallas import tpu as pltpu


# ----------------------------------------------------------------------------
# Pallas kernel: one grid step = TT timesteps.  Forward direction consumes
# times [tb*TT, (tb+1)*TT); backward direction consumes the mirrored window
# (handled by reversed BlockSpec index maps).  The per-direction hidden state
# (2, B, H) lives in VMEM scratch and is carried across grid steps.
# ----------------------------------------------------------------------------
def bigru_kernel(gi_f_ref, gi_b_ref, len_ref, whh_ref, bhh_ref,
                 out_f_ref, out_b_ref, hid_ref,
                 h_scratch, *, TT, H, T_pad):
    tb = pl.program_id(0)

    @pl.when(tb == 0)
    def _():
        h_scratch[...] = jnp.zeros_like(h_scratch)

    whh_f = whh_ref[0]        # (H, 3H)
    whh_b = whh_ref[1]        # (H, 3H)
    bhh_f = bhh_ref[0]        # (1, 3H)
    bhh_b = bhh_ref[1]        # (1, 3H)
    lengths = len_ref[...]    # (B, 1) int32

    def gates(gi, gh, h_d):
        # PyTorch GRU gate order: r, z, n.  One sigmoid over the r/z slab.
        rz = jax.nn.sigmoid(gi[:, :2 * H] + gh[:, :2 * H])
        r = rz[:, :H]
        z = rz[:, H:]
        n = jnp.tanh(gi[:, 2 * H:] + r * gh[:, 2 * H:])
        return (1.0 - z) * n + z * h_d

    def step(i, carry):
        t_fwd = tb * TT + i            # forward global time (padded time axis)
        t_bwd = T_pad - 1 - t_fwd      # backward global time
        j = TT - 1 - i                 # backward row inside this (reversed) block

        h_f = h_scratch[0]             # (B, H)
        h_b = h_scratch[1]             # (B, H)

        # Per-direction recurrent projection (MXU).
        gh_f = jnp.dot(h_f, whh_f, preferred_element_type=jnp.float32) + bhh_f
        gh_b = jnp.dot(h_b, whh_b, preferred_element_type=jnp.float32) + bhh_b

        hn_f = gates(gi_f_ref[i], gh_f, h_f)
        hn_b = gates(gi_b_ref[j], gh_b, h_b)

        # pack_padded / pad_packed semantics: zero padded outputs, freeze the
        # hidden state past each sequence's length.
        m_f = (t_fwd < lengths).astype(jnp.float32)   # (B, 1)
        m_b = (t_bwd < lengths).astype(jnp.float32)   # (B, 1)
        o_f = m_f * hn_f
        o_b = m_b * hn_b
        out_f_ref[i] = o_f.astype(out_f_ref.dtype)
        out_b_ref[j] = o_b.astype(out_b_ref.dtype)
        h_scratch[0] = o_f + (1.0 - m_f) * h_f
        h_scratch[1] = o_b + (1.0 - m_b) * h_b
        return carry

    lax.fori_loop(0, TT, step, 0, unroll=True)

    @pl.when(tb == pl.num_programs(0) - 1)
    def _():
        hid_ref[...] = h_scratch[...].astype(hid_ref.dtype)


# ----------------------------------------------------------------------------
# Wrapper
# ----------------------------------------------------------------------------
def encoder_rnn_forward(input_seq, input_lengths, params, hidden_size, *, tt=4):
    """input_seq: (T, B) int32 (seq-major), input_lengths: (B,) int32."""
    T, B = input_seq.shape
    H = hidden_size

    # --- glue in XLA (gather) ------------------------------------------------
    embedded = jnp.take(params["embedding"], input_seq, axis=0)        # (T, B, H)

    # --- hoisted input projection: one big MXU-friendly GEMM -----------------
    wih_cat = jnp.concatenate([params["wih_f"], params["wih_b"]], axis=1)  # (H, 6H)
    bih_cat = jnp.concatenate([params["bih_f"], params["bih_b"]], axis=1)  # (1, 6H)
    gi = embedded.reshape(T * B, H) @ wih_cat + bih_cat                    # (T*B, 6H)
    gi = gi.reshape(T, B, 6 * H)

    # --- coarsened time grid: pad T to a multiple of TT (mask keeps padding
    #     inert: outputs zero, hidden frozen) ---------------------------------
    TT = max(1, min(tt, T))
    T_pad = ((T + TT - 1) // TT) * TT
    if T_pad != T:
        gi = jnp.pad(gi, ((0, T_pad - T), (0, 0), (0, 0)))
    num_tb = T_pad // TT

    # --- stacked recurrent weights (no wasted block-diagonal zeros) ----------
    whh = jnp.stack([params["whh_f"], params["whh_b"]], axis=0)            # (2, H, 3H)
    bhh = jnp.stack([params["bhh_f"], params["bhh_b"]], axis=0)            # (2, 1, 3H)

    lengths = input_lengths.astype(jnp.int32).reshape(B, 1)

    # gi is passed twice but the two streams read DISJOINT halves of the last
    # dim (forward half at time block tb, backward half at the mirrored block),
    # so each HBM byte is DMA'd exactly once.
    gi_f_spec = pl.BlockSpec((TT, B, 3 * H), lambda t: (t, 0, 0))
    gi_b_spec = pl.BlockSpec((TT, B, 3 * H), lambda t: (num_tb - 1 - t, 0, 1))
    len_spec = pl.BlockSpec((B, 1), lambda t: (0, 0))
    whh_spec = pl.BlockSpec((2, H, 3 * H), lambda t: (0, 0, 0))
    bhh_spec = pl.BlockSpec((2, 1, 3 * H), lambda t: (0, 0, 0))
    out_f_spec = pl.BlockSpec((TT, B, H), lambda t: (t, 0, 0))
    out_b_spec = pl.BlockSpec((TT, B, H), lambda t: (num_tb - 1 - t, 0, 0))
    hid_spec = pl.BlockSpec((2, B, H), lambda t: (0, 0, 0))

    kernel = functools.partial(bigru_kernel, TT=TT, H=H, T_pad=T_pad)

    out_f, out_b, hidden = pl.pallas_call(
        kernel,
        out_shape=(
            jax.ShapeDtypeStruct((T_pad, B, H), jnp.float32),
            jax.ShapeDtypeStruct((T_pad, B, H), jnp.float32),
            jax.ShapeDtypeStruct((2, B, H), jnp.float32),
        ),
        grid_spec=pltpu.PrefetchScalarGridSpec(
            num_scalar_prefetch=0,
            grid=(num_tb,),
            in_specs=[gi_f_spec, gi_b_spec, len_spec, whh_spec, bhh_spec],
            out_specs=[out_f_spec, out_b_spec, hid_spec],
            scratch_shapes=[pltpu.VMEM((2, B, H), jnp.float32)],
        ),
        compiler_params=pltpu.CompilerParams(
            dimension_semantics=("arbitrary",)),  # sequential recurrence
    )(gi, gi, lengths, whh, bhh)

    # Direction sum + strip time padding: trivial elementwise work, left to XLA.
    outputs = (out_f + out_b)[:T]
    return outputs, hidden


# ----------------------------------------------------------------------------
# Pure-JAX reference (for correctness check)
# ----------------------------------------------------------------------------
def encoder_rnn_reference(input_seq, input_lengths, params, hidden_size):
    T, B = input_seq.shape
    H = hidden_size
    x = jnp.take(params["embedding"], input_seq, axis=0)  # (T, B, H)
    t_ids = jnp.arange(T, dtype=jnp.int32)[:, None]
    mask = (t_ids < input_lengths[None, :]).astype(jnp.float32)[..., None]

    def cell(h, x_t, m_t, wih, whh, bih, bhh):
        gi = x_t @ wih + bih
        gh = h @ whh + bhh
        r = jax.nn.sigmoid(gi[:, :H] + gh[:, :H])
        z = jax.nn.sigmoid(gi[:, H:2 * H] + gh[:, H:2 * H])
        n = jnp.tanh(gi[:, 2 * H:] + r * gh[:, 2 * H:])
        h_new = (1.0 - z) * n + z * h
        out = m_t * h_new
        return out + (1.0 - m_t) * h, out

    h_f = jnp.zeros((B, H), jnp.float32)
    h_b = jnp.zeros((B, H), jnp.float32)
    outs_f = [None] * T
    outs_b = [None] * T
    for t in range(T):
        h_f, outs_f[t] = cell(h_f, x[t], mask[t],
                              params["wih_f"], params["whh_f"],
                              params["bih_f"], params["bhh_f"])
    for t in range(T - 1, -1, -1):
        h_b, outs_b[t] = cell(h_b, x[t], mask[t],
                              params["wih_b"], params["whh_b"],
                              params["bih_b"], params["bhh_b"])
    out_f = jnp.stack(outs_f)
    out_b = jnp.stack(outs_b)
    return out_f + out_b, jnp.stack([h_f, h_b])


# ----------------------------------------------------------------------------
# Deterministic parameter init (PyTorch-style uniform(-1/sqrt(H), 1/sqrt(H)))
# ----------------------------------------------------------------------------
def init_params(key, vocab_size, hidden_size):
    H = hidden_size
    k = 1.0 / math.sqrt(H)
    keys = jax.random.split(key, 9)
    uni = lambda kk, shape: jax.random.uniform(kk, shape, jnp.float32, -k, k)
    return {
        "embedding": jax.random.normal(keys[0], (vocab_size, H), jnp.float32),
        # weights stored pre-transposed as (H, 3H); gate order r, z, n
        "wih_f": uni(keys[1], (H, 3 * H)),
        "whh_f": uni(keys[2], (H, 3 * H)),
        "bih_f": uni(keys[3], (1, 3 * H)),
        "bhh_f": uni(keys[4], (1, 3 * H)),
        "wih_b": uni(keys[5], (H, 3 * H)),
        "whh_b": uni(keys[6], (H, 3 * H)),
        "bih_b": uni(keys[7], (1, 3 * H)),
        "bhh_b": uni(keys[8], (1, 3 * H)),
    }


if __name__ == "__main__":
    # Small, layout-friendly shapes: B=8 (full sublane), H=128 (full lane).
    T, B, H, V = 8, 8, 128, 20

    key = jax.random.PRNGKey(0)
    k_par, k_seq = jax.random.split(key)
    params = init_params(k_par, V, H)

    # token indices (T, B); lengths sorted descending like pack_padded_sequence
    input_seq = jax.random.randint(k_seq, (T, B), 3, V, dtype=jnp.int32)
    input_lengths = jnp.array([8, 7, 6, 5, 4, 3, 2, 1], dtype=jnp.int32)
    # zero out tokens past each length (PAD_token = 0) for realism
    t_ids = jnp.arange(T, dtype=jnp.int32)[:, None]
    input_seq = jnp.where(t_ids < input_lengths[None, :], input_seq, 0)

    outputs, hidden = encoder_rnn_forward(input_seq, input_lengths, params, H,
                                          tt=4)
    jax.block_until_ready(outputs)
    jax.block_until_ready(hidden)

    ref_out, ref_hid = encoder_rnn_reference(input_seq, input_lengths, params, H)
    assert outputs.shape == (T, B, H) and hidden.shape == (2, B, H)
    assert jnp.allclose(outputs, ref_out, atol=1e-4, rtol=1e-4)
    assert jnp.allclose(hidden, ref_hid, atol=1e-4, rtol=1e-4)

    print("KERNEL_OK")
</pallas_src>

<mosaic_0001>
module attributes {stable_mosaic.version = 11 : i64} {
  func.func @bigru_kernel(%arg0: i32, %arg1: memref<4x8x384xf32, #tpu.memory_space<vmem>>, %arg2: memref<4x8x384xf32, #tpu.memory_space<vmem>>, %arg3: memref<8x1xi32, #tpu.memory_space<vmem>>, %arg4: memref<2x128x384xf32, #tpu.memory_space<vmem>>, %arg5: memref<2x1x384xf32, #tpu.memory_space<vmem>>, %arg6: memref<4x8x128xf32, #tpu.memory_space<vmem>>, %arg7: memref<4x8x128xf32, #tpu.memory_space<vmem>>, %arg8: memref<2x8x128xf32, #tpu.memory_space<vmem>>, %arg9: memref<2x8x128xf32, #tpu.memory_space<vmem>>) attributes {dimension_semantics = [#tpu.dimension_semantics<arbitrary>], iteration_bounds = array<i64: 2>, scalar_prefetch = 0 : i64, scratch_operands = 1 : i64, tpu.core_type = #tpu.core_type<tc>, window_params = [{transform_indices = @transform_0, window_bounds = array<i64: 4, 8, 384>}, {transform_indices = @transform_1, window_bounds = array<i64: 4, 8, 384>}, {pipeline_mode = #tpu.pipeline_mode<synchronous>, transform_indices = @transform_2, window_bounds = array<i64: 8, 1>}, {pipeline_mode = #tpu.pipeline_mode<synchronous>, transform_indices = @transform_3, window_bounds = array<i64: 2, 128, 384>}, {pipeline_mode = #tpu.pipeline_mode<synchronous>, transform_indices = @transform_4, window_bounds = array<i64: 2, 1, 384>}, {transform_indices = @transform_5, window_bounds = array<i64: 4, 8, 128>}, {transform_indices = @transform_6, window_bounds = array<i64: 4, 8, 128>}, {pipeline_mode = #tpu.pipeline_mode<synchronous>, transform_indices = @transform_7, window_bounds = array<i64: 2, 8, 128>}]} {
    %c0_i32 = arith.constant 0 : i32
    %0 = arith.cmpi eq, %arg0, %c0_i32 : i32
    %1 = arith.extui %0 : i1 to i32
    %c0_i32_0 = arith.constant 0 : i32
    %2 = arith.cmpi ne, %1, %c0_i32_0 : i32
    scf.if %2 {
      %cst_138 = arith.constant 0.000000e+00 : f32
      %399 = vector.broadcast %cst_138 : f32 to vector<2x8x128xf32>
      %c0_139 = arith.constant 0 : index
      %c0_140 = arith.constant 0 : index
      %c0_141 = arith.constant 0 : index
      %400 = vector.load %arg9[%c0_139, %c0_140, %c0_141] : memref<2x8x128xf32, #tpu.memory_space<vmem>>, vector<2x8x128xf32>
      tpu.vector_store %arg9[%c0_139, %c0_140, %c0_141], %399 {strides = array<i32>} : memref<2x8x128xf32, #tpu.memory_space<vmem>>, vector<2x8x128xf32>,
    } else {
    }
    %c0 = arith.constant 0 : index
    %c0_1 = arith.constant 0 : index
    %c0_2 = arith.constant 0 : index
    %3 = vector.load %arg4[%c0, %c0_1, %c0_2] : memref<2x128x384xf32, #tpu.memory_space<vmem>>, vector<1x128x384xf32>
    %4 = vector.shape_cast %3 : vector<1x128x384xf32> to vector<128x384xf32>
    %c1 = arith.constant 1 : index
    %c0_3 = arith.constant 0 : index
    %c0_4 = arith.constant 0 : index
    %5 = vector.load %arg4[%c1, %c0_3, %c0_4] : memref<2x128x384xf32, #tpu.memory_space<vmem>>, vector<1x128x384xf32>
    %6 = vector.shape_cast %5 : vector<1x128x384xf32> to vector<128x384xf32>
    %c0_5 = arith.constant 0 : index
    %c0_6 = arith.constant 0 : index
    %c0_7 = arith.constant 0 : index
    %7 = vector.load %arg5[%c0_5, %c0_6, %c0_7] : memref<2x1x384xf32, #tpu.memory_space<vmem>>, vector<1x1x384xf32>
    %8 = vector.shape_cast %7 : vector<1x1x384xf32> to vector<1x384xf32>
    %c1_8 = arith.constant 1 : index
    %c0_9 = arith.constant 0 : index
    %c0_10 = arith.constant 0 : index
    %9 = vector.load %arg5[%c1_8, %c0_9, %c0_10] : memref<2x1x384xf32, #tpu.memory_space<vmem>>, vector<1x1x384xf32>
    %10 = vector.shape_cast %9 : vector<1x1x384xf32> to vector<1x384xf32>
    %c0_11 = arith.constant 0 : index
    %c0_12 = arith.constant 0 : index
    %11 = vector.load %arg3[%c0_11, %c0_12] : memref<8x1xi32, #tpu.memory_space<vmem>>, vector<8x1xi32>
    %c0_i32_13 = arith.constant 0 : i32
    %c4_i32 = arith.constant 4 : i32
    %12 = arith.muli %arg0, %c4_i32 : i32
    %13 = arith.addi %12, %c0_i32_13 : i32
    %c7_i32 = arith.constant 7 : i32
    %14 = arith.subi %c7_i32, %13 : i32
    %c3_i32 = arith.constant 3 : i32
    %15 = arith.subi %c3_i32, %c0_i32_13 : i32
    %c0_14 = arith.constant 0 : index
    %c0_15 = arith.constant 0 : index
    %c0_16 = arith.constant 0 : index
    %16 = vector.load %arg9[%c0_14, %c0_15, %c0_16] : memref<2x8x128xf32, #tpu.memory_space<vmem>>, vector<1x8x128xf32>
    %17 = vector.shape_cast %16 : vector<1x8x128xf32> to vector<8x128xf32>
    %c1_17 = arith.constant 1 : index
    %c0_18 = arith.constant 0 : index
    %c0_19 = arith.constant 0 : index
    %18 = vector.load %arg9[%c1_17, %c0_18, %c0_19] : memref<2x8x128xf32, #tpu.memory_space<vmem>>, vector<1x8x128xf32>
    %19 = vector.shape_cast %18 : vector<1x8x128xf32> to vector<8x128xf32>
    %cst = arith.constant dense<0.000000e+00> : vector<8x384xf32>
    %20 = tpu.matmul %17, %4, %cst {dimension_numbers = #tpu.dot_dimension_numbers<[1], [0], [0], [1], [0, 0, 1, 1], [], []>} : vector<8x128xf32>, vector<128x384xf32>, vector<8x384xf32> -> vector<8x384xf32>
    %21 = vector.broadcast %8 : vector<1x384xf32> to vector<8x384xf32>
    %22 = arith.addf %20, %21 : vector<8x384xf32>
    %cst_20 = arith.constant dense<0.000000e+00> : vector<8x384xf32>
    %23 = tpu.matmul %19, %6, %cst_20 {dimension_numbers = #tpu.dot_dimension_numbers<[1], [0], [0], [1], [0, 0, 1, 1], [], []>} : vector<8x128xf32>, vector<128x384xf32>, vector<8x384xf32> -> vector<8x384xf32>
    %24 = vector.broadcast %10 : vector<1x384xf32> to vector<8x384xf32>
    %25 = arith.addf %23, %24 : vector<8x384xf32>
    %26 = arith.index_cast %c0_i32_13 : i32 to index
    %c0_21 = arith.constant 0 : index
    %c0_22 = arith.constant 0 : index
    %27 = vector.load %arg1[%26, %c0_21, %c0_22] : memref<4x8x384xf32, #tpu.memory_space<vmem>>, vector<1x8x384xf32>
    %28 = vector.shape_cast %27 : vector<1x8x384xf32> to vector<8x384xf32>
    %29 = vector.extract_strided_slice %28 {offsets = [0, 0], sizes = [8, 256], strides = [1, 1]} : vector<8x384xf32> to vector<8x256xf32>
    %30 = vector.extract_strided_slice %22 {offsets = [0, 0], sizes = [8, 256], strides = [1, 1]} : vector<8x384xf32> to vector<8x256xf32>
    %31 = arith.addf %29, %30 : vector<8x256xf32>
    %32 = arith.negf %31 : vector<8x256xf32>
    %33 = math.exp %32 : vector<8x256xf32>
    %cst_23 = arith.constant 1.000000e+00 : f32
    %34 = vector.broadcast %cst_23 : f32 to vector<8x256xf32>
    %35 = arith.addf %34, %33 : vector<8x256xf32>
    %36 = arith.divf %34, %35 : vector<8x256xf32>
    %37 = vector.extract_strided_slice %36 {offsets = [0, 0], sizes = [8, 128], strides = [1, 1]} : vector<8x256xf32> to vector<8x128xf32>
    %38 = vector.extract_strided_slice %36 {offsets = [0, 128], sizes = [8, 128], strides = [1, 1]} : vector<8x256xf32> to vector<8x128xf32>
    %39 = vector.extract_strided_slice %28 {offsets = [0, 256], sizes = [8, 128], strides = [1, 1]} : vector<8x384xf32> to vector<8x128xf32>
    %40 = vector.extract_strided_slice %22 {offsets = [0, 256], sizes = [8, 128], strides = [1, 1]} : vector<8x384xf32> to vector<8x128xf32>
    %41 = arith.mulf %37, %40 : vector<8x128xf32>
    %42 = arith.addf %39, %41 : vector<8x128xf32>
    %43 = math.tanh %42 : vector<8x128xf32>
    %cst_24 = arith.constant 1.000000e+00 : f32
    %44 = vector.broadcast %cst_24 : f32 to vector<8x128xf32>
    %45 = arith.subf %44, %38 : vector<8x128xf32>
    %46 = arith.mulf %45, %43 : vector<8x128xf32>
    %47 = arith.mulf %38, %17 : vector<8x128xf32>
    %48 = arith.addf %46, %47 : vector<8x128xf32>
    %49 = arith.index_cast %15 : i32 to index
    %c0_25 = arith.constant 0 : index
    %c0_26 = arith.constant 0 : index
    %50 = vector.load %arg2[%49, %c0_25, %c0_26] : memref<4x8x384xf32, #tpu.memory_space<vmem>>, vector<1x8x384xf32>
    %51 = vector.shape_cast %50 : vector<1x8x384xf32> to vector<8x384xf32>
    %52 = vector.extract_strided_slice %51 {offsets = [0, 0], sizes = [8, 256], strides = [1, 1]} : vector<8x384xf32> to vector<8x256xf32>
    %53 = vector.extract_strided_slice %25 {offsets = [0, 0], sizes = [8, 256], strides = [1, 1]} : vector<8x384xf32> to vector<8x256xf32>
    %54 = arith.addf %52, %53 : vector<8x256xf32>
    %55 = arith.negf %54 : vector<8x256xf32>
    %56 = math.exp %55 : vector<8x256xf32>
    %cst_27 = arith.constant 1.000000e+00 : f32
    %57 = vector.broadcast %cst_27 : f32 to vector<8x256xf32>
    %58 = arith.addf %57, %56 : vector<8x256xf32>
    %59 = arith.divf %57, %58 : vector<8x256xf32>
    %60 = vector.extract_strided_slice %59 {offsets = [0, 0], sizes = [8, 128], strides = [1, 1]} : vector<8x256xf32> to vector<8x128xf32>
    %61 = vector.extract_strided_slice %59 {offsets = [0, 128], sizes = [8, 128], strides = [1, 1]} : vector<8x256xf32> to vector<8x128xf32>
    %62 = vector.extract_strided_slice %51 {offsets = [0, 256], sizes = [8, 128], strides = [1, 1]} : vector<8x384xf32> to vector<8x128xf32>
    %63 = vector.extract_strided_slice %25 {offsets = [0, 256], sizes = [8, 128], strides = [1, 1]} : vector<8x384xf32> to vector<8x128xf32>
    %64 = arith.mulf %60, %63 : vector<8x128xf32>
    %65 = arith.addf %62, %64 : vector<8x128xf32>
    %66 = math.tanh %65 : vector<8x128xf32>
    %cst_28 = arith.constant 1.000000e+00 : f32
    %67 = vector.broadcast %cst_28 : f32 to vector<8x128xf32>
    %68 = arith.subf %67, %61 : vector<8x128xf32>
    %69 = arith.mulf %68, %66 : vector<8x128xf32>
    %70 = arith.mulf %61, %19 : vector<8x128xf32>
    %71 = arith.addf %69, %70 : vector<8x128xf32>
    %72 = vector.broadcast %13 : i32 to vector<8x1xi32>
    %73 = arith.cmpi slt, %72, %11 : vector<8x1xi32>
    %74 = arith.extui %73 : vector<8x1xi1> to vector<8x1xi32>
    %75 = arith.sitofp %74 : vector<8x1xi32> to vector<8x1xf32>
    %76 = vector.broadcast %14 : i32 to vector<8x1xi32>
    %77 = arith.cmpi slt, %76, %11 : vector<8x1xi32>
    %78 = arith.extui %77 : vector<8x1xi1> to vector<8x1xi32>
    %79 = arith.sitofp %78 : vector<8x1xi32> to vector<8x1xf32>
    %80 = vector.broadcast %75 : vector<8x1xf32> to vector<8x128xf32>
    %81 = arith.mulf %80, %48 : vector<8x128xf32>
    %82 = vector.broadcast %79 : vector<8x1xf32> to vector<8x128xf32>
    %83 = arith.mulf %82, %71 : vector<8x128xf32>
    %84 = arith.index_cast %c0_i32_13 : i32 to index
    %c0_29 = arith.constant 0 : index
    %c0_30 = arith.constant 0 : index
    %85 = vector.load %arg6[%84, %c0_29, %c0_30] : memref<4x8x128xf32, #tpu.memory_space<vmem>>, vector<1x8x128xf32>
    %86 = vector.shape_cast %85 : vector<1x8x128xf32> to vector<8x128xf32>
    %87 = vector.shape_cast %81 : vector<8x128xf32> to vector<1x8x128xf32>
    tpu.vector_store %arg6[%84, %c0_29, %c0_30], %87 {strides = array<i32>} : memref<4x8x128xf32, #tpu.memory_space<vmem>>, vector<1x8x128xf32>,
    %88 = arith.index_cast %15 : i32 to index
    %c0_31 = arith.constant 0 : index
    %c0_32 = arith.constant 0 : index
    %89 = vector.load %arg7[%88, %c0_31, %c0_32] : memref<4x8x128xf32, #tpu.memory_space<vmem>>, vector<1x8x128xf32>
    %90 = vector.shape_cast %89 : vector<1x8x128xf32> to vector<8x128xf32>
    %91 = vector.shape_cast %83 : vector<8x128xf32> to vector<1x8x128xf32>
    tpu.vector_store %arg7[%88, %c0_31, %c0_32], %91 {strides = array<i32>} : memref<4x8x128xf32, #tpu.memory_space<vmem>>, vector<1x8x128xf32>,
    %cst_33 = arith.constant 1.000000e+00 : f32
    %92 = vector.broadcast %cst_33 : f32 to vector<8x1xf32>
    %93 = arith.subf %92, %75 : vector<8x1xf32>
    %94 = vector.broadcast %93 : vector<8x1xf32> to vector<8x128xf32>
    %95 = arith.mulf %94, %17 : vector<8x128xf32>
    %96 = arith.addf %81, %95 : vector<8x128xf32>
    %c0_34 = arith.constant 0 : index
    %c0_35 = arith.constant 0 : index
    %c0_36 = arith.constant 0 : index
    %97 = vector.load %arg9[%c0_34, %c0_35, %c0_36] : memref<2x8x128xf32, #tpu.memory_space<vmem>>, vector<1x8x128xf32>
    %98 = vector.shape_cast %97 : vector<1x8x128xf32> to vector<8x128xf32>
    %99 = vector.shape_cast %96 : vector<8x128xf32> to vector<1x8x128xf32>
    tpu.vector_store %arg9[%c0_34, %c0_35, %c0_36], %99 {strides = array<i32>} : memref<2x8x128xf32, #tpu.memory_space<vmem>>, vector<1x8x128xf32>,
    %cst_37 = arith.constant 1.000000e+00 : f32
    %100 = vector.broadcast %cst_37 : f32 to vector<8x1xf32>
    %101 = arith.subf %100, %79 : vector<8x1xf32>
    %102 = vector.broadcast %101 : vector<8x1xf32> to vector<8x128xf32>
    %103 = arith.mulf %102, %19 : vector<8x128xf32>
    %104 = arith.addf %83, %103 : vector<8x128xf32>
    %c1_38 = arith.constant 1 : index
    %c0_39 = arith.constant 0 : index
    %c0_40 = arith.constant 0 : index
    %105 = vector.load %arg9[%c1_38, %c0_39, %c0_40] : memref<2x8x128xf32, #tpu.memory_space<vmem>>, vector<1x8x128xf32>
    %106 = vector.shape_cast %105 : vector<1x8x128xf32> to vector<8x128xf32>
    %107 = vector.shape_cast %104 : vector<8x128xf32> to vector<1x8x128xf32>
    tpu.vector_store %arg9[%c1_38, %c0_39, %c0_40], %107 {strides = array<i32>} : memref<2x8x128xf32, #tpu.memory_space<vmem>>, vector<1x8x128xf32>,
    %c1_i32 = arith.constant 1 : i32
    %c4_i32_41 = arith.constant 4 : i32
    %108 = arith.muli %arg0, %c4_i32_41 : i32
    %109 = arith.addi %108, %c1_i32 : i32
    %c7_i32_42 = arith.constant 7 : i32
    %110 = arith.subi %c7_i32_42, %109 : i32
    %c3_i32_43 = arith.constant 3 : i32
    %111 = arith.subi %c3_i32_43, %c1_i32 : i32
    %c0_44 = arith.constant 0 : index
    %c0_45 = arith.constant 0 : index
    %c0_46 = arith.constant 0 : index
    %112 = vector.load %arg9[%c0_44, %c0_45, %c0_46] : memref<2x8x128xf32, #tpu.memory_space<vmem>>, vector<1x8x128xf32>
    %113 = vector.shape_cast %112 : vector<1x8x128xf32> to vector<8x128xf32>
    %c1_47 = arith.constant 1 : index
    %c0_48 = arith.constant 0 : index
    %c0_49 = arith.constant 0 : index
    %114 = vector.load %arg9[%c1_47, %c0_48, %c0_49] : memref<2x8x128xf32, #tpu.memory_space<vmem>>, vector<1x8x128xf32>
    %115 = vector.shape_cast %114 : vector<1x8x128xf32> to vector<8x128xf32>
    %cst_50 = arith.constant dense<0.000000e+00> : vector<8x384xf32>
    %116 = tpu.matmul %113, %4, %cst_50 {dimension_numbers = #tpu.dot_dimension_numbers<[1], [0], [0], [1], [0, 0, 1, 1], [], []>} : vector<8x128xf32>, vector<128x384xf32>, vector<8x384xf32> -> vector<8x384xf32>
    %117 = vector.broadcast %8 : vector<1x384xf32> to vector<8x384xf32>
    %118 = arith.addf %116, %117 : vector<8x384xf32>
    %cst_51 = arith.constant dense<0.000000e+00> : vector<8x384xf32>
    %119 = tpu.matmul %115, %6, %cst_51 {dimension_numbers = #tpu.dot_dimension_numbers<[1], [0], [0], [1], [0, 0, 1, 1], [], []>} : vector<8x128xf32>, vector<128x384xf32>, vector<8x384xf32> -> vector<8x384xf32>
    %120 = vector.broadcast %10 : vector<1x384xf32> to vector<8x384xf32>
    %121 = arith.addf %119, %120 : vector<8x384xf32>
    %122 = arith.index_cast %c1_i32 : i32 to index
    %c0_52 = arith.constant 0 : index
    %c0_53 = arith.constant 0 : index
    %123 = vector.load %arg1[%122, %c0_52, %c0_53] : memref<4x8x384xf32, #tpu.memory_space<vmem>>, vector<1x8x384xf32>
    %124 = vector.shape_cast %123 : vector<1x8x384xf32> to vector<8x384xf32>
    %125 = vector.extract_strided_slice %124 {offsets = [0, 0], sizes = [8, 256], strides = [1, 1]} : vector<8x384xf32> to vector<8x256xf32>
    %126 = vector.extract_strided_slice %118 {offsets = [0, 0], sizes = [8, 256], strides = [1, 1]} : vector<8x384xf32> to vector<8x256xf32>
    %127 = arith.addf %125, %126 : vector<8x256xf32>
    %128 = arith.negf %127 : vector<8x256xf32>
    %129 = math.exp %128 : vector<8x256xf32>
    %cst_54 = arith.constant 1.000000e+00 : f32
    %130 = vector.broadcast %cst_54 : f32 to vector<8x256xf32>
    %131 = arith.addf %130, %129 : vector<8x256xf32>
    %132 = arith.divf %130, %131 : vector<8x256xf32>
    %133 = vector.extract_strided_slice %132 {offsets = [0, 0], sizes = [8, 128], strides = [1, 1]} : vector<8x256xf32> to vector<8x128xf32>
    %134 = vector.extract_strided_slice %132 {offsets = [0, 128], sizes = [8, 128], strides = [1, 1]} : vector<8x256xf32> to vector<8x128xf32>
    %135 = vector.extract_strided_slice %124 {offsets = [0, 256], sizes = [8, 128], strides = [1, 1]} : vector<8x384xf32> to vector<8x128xf32>
    %136 = vector.extract_strided_slice %118 {offsets = [0, 256], sizes = [8, 128], strides = [1, 1]} : vector<8x384xf32> to vector<8x128xf32>
    %137 = arith.mulf %133, %136 : vector<8x128xf32>
    %138 = arith.addf %135, %137 : vector<8x128xf32>
    %139 = math.tanh %138 : vector<8x128xf32>
    %cst_55 = arith.constant 1.000000e+00 : f32
    %140 = vector.broadcast %cst_55 : f32 to vector<8x128xf32>
    %141 = arith.subf %140, %134 : vector<8x128xf32>
    %142 = arith.mulf %141, %139 : vector<8x128xf32>
    %143 = arith.mulf %134, %113 : vector<8x128xf32>
    %144 = arith.addf %142, %143 : vector<8x128xf32>
    %145 = arith.index_cast %111 : i32 to index
    %c0_56 = arith.constant 0 : index
    %c0_57 = arith.constant 0 : index
    %146 = vector.load %arg2[%145, %c0_56, %c0_57] : memref<4x8x384xf32, #tpu.memory_space<vmem>>, vector<1x8x384xf32>
    %147 = vector.shape_cast %146 : vector<1x8x384xf32> to vector<8x384xf32>
    %148 = vector.extract_strided_slice %147 {offsets = [0, 0], sizes = [8, 256], strides = [1, 1]} : vector<8x384xf32> to vector<8x256xf32>
    %149 = vector.extract_strided_slice %121 {offsets = [0, 0], sizes = [8, 256], strides = [1, 1]} : vector<8x384xf32> to vector<8x256xf32>
    %150 = arith.addf %148, %149 : vector<8x256xf32>
    %151 = arith.negf %150 : vector<8x256xf32>
    %152 = math.exp %151 : vector<8x256xf32>
    %cst_58 = arith.constant 1.000000e+00 : f32
    %153 = vector.broadcast %cst_58 : f32 to vector<8x256xf32>
    %154 = arith.addf %153, %152 : vector<8x256xf32>
    %155 = arith.divf %153, %154 : vector<8x256xf32>
    %156 = vector.extract_strided_slice %155 {offsets = [0, 0], sizes = [8, 128], strides = [1, 1]} : vector<8x256xf32> to vector<8x128xf32>
    %157 = vector.extract_strided_slice %155 {offsets = [0, 128], sizes = [8, 128], strides = [1, 1]} : vector<8x256xf32> to vector<8x128xf32>
    %158 = vector.extract_strided_slice %147 {offsets = [0, 256], sizes = [8, 128], strides = [1, 1]} : vector<8x384xf32> to vector<8x128xf32>
    %159 = vector.extract_strided_slice %121 {offsets = [0, 256], sizes = [8, 128], strides = [1, 1]} : vector<8x384xf32> to vector<8x128xf32>
    %160 = arith.mulf %156, %159 : vector<8x128xf32>
    %161 = arith.addf %158, %160 : vector<8x128xf32>
    %162 = math.tanh %161 : vector<8x128xf32>
    %cst_59 = arith.constant 1.000000e+00 : f32
    %163 = vector.broadcast %cst_59 : f32 to vector<8x128xf32>
    %164 = arith.subf %163, %157 : vector<8x128xf32>
    %165 = arith.mulf %164, %162 : vector<8x128xf32>
    %166 = arith.mulf %157, %115 : vector<8x128xf32>
    %167 = arith.addf %165, %166 : vector<8x128xf32>
    %168 = vector.broadcast %109 : i32 to vector<8x1xi32>
    %169 = arith.cmpi slt, %168, %11 : vector<8x1xi32>
    %170 = arith.extui %169 : vector<8x1xi1> to vector<8x1xi32>
    %171 = arith.sitofp %170 : vector<8x1xi32> to vector<8x1xf32>
    %172 = vector.broadcast %110 : i32 to vector<8x1xi32>
    %173 = arith.cmpi slt, %172, %11 : vector<8x1xi32>
    %174 = arith.extui %173 : vector<8x1xi1> to vector<8x1xi32>
    %175 = arith.sitofp %174 : vector<8x1xi32> to vector<8x1xf32>
    %176 = vector.broadcast %171 : vector<8x1xf32> to vector<8x128xf32>
    %177 = arith.mulf %176, %144 : vector<8x128xf32>
    %178 = vector.broadcast %175 : vector<8x1xf32> to vector<8x128xf32>
    %179 = arith.mulf %178, %167 : vector<8x128xf32>
    %180 = arith.index_cast %c1_i32 : i32 to index
    %c0_60 = arith.constant 0 : index
    %c0_61 = arith.constant 0 : index
    %181 = vector.load %arg6[%180, %c0_60, %c0_61] : memref<4x8x128xf32, #tpu.memory_space<vmem>>, vector<1x8x128xf32>
    %182 = vector.shape_cast %181 : vector<1x8x128xf32> to vector<8x128xf32>
    %183 = vector.shape_cast %177 : vector<8x128xf32> to vector<1x8x128xf32>
    tpu.vector_store %arg6[%180, %c0_60, %c0_61], %183 {strides = array<i32>} : memref<4x8x128xf32, #tpu.memory_space<vmem>>, vector<1x8x128xf32>,
    %184 = arith.index_cast %111 : i32 to index
    %c0_62 = arith.constant 0 : index
    %c0_63 = arith.constant 0 : index
    %185 = vector.load %arg7[%184, %c0_62, %c0_63] : memref<4x8x128xf32, #tpu.memory_space<vmem>>, vector<1x8x128xf32>
    %186 = vector.shape_cast %185 : vector<1x8x128xf32> to vector<8x128xf32>
    %187 = vector.shape_cast %179 : vector<8x128xf32> to vector<1x8x128xf32>
    tpu.vector_store %arg7[%184, %c0_62, %c0_63], %187 {strides = array<i32>} : memref<4x8x128xf32, #tpu.memory_space<vmem>>, vector<1x8x128xf32>,
    %cst_64 = arith.constant 1.000000e+00 : f32
    %188 = vector.broadcast %cst_64 : f32 to vector<8x1xf32>
    %189 = arith.subf %188, %171 : vector<8x1xf32>
    %190 = vector.broadcast %189 : vector<8x1xf32> to vector<8x128xf32>
    %191 = arith.mulf %190, %113 : vector<8x128xf32>
    %192 = arith.addf %177, %191 : vector<8x128xf32>
    %c0_65 = arith.constant 0 : index
    %c0_66 = arith.constant 0 : index
    %c0_67 = arith.constant 0 : index
    %193 = vector.load %arg9[%c0_65, %c0_66, %c0_67] : memref<2x8x128xf32, #tpu.memory_space<vmem>>, vector<1x8x128xf32>
    %194 = vector.shape_cast %193 : vector<1x8x128xf32> to vector<8x128xf32>
    %195 = vector.shape_cast %192 : vector<8x128xf32> to vector<1x8x128xf32>
    tpu.vector_store %arg9[%c0_65, %c0_66, %c0_67], %195 {strides = array<i32>} : memref<2x8x128xf32, #tpu.memory_space<vmem>>, vector<1x8x128xf32>,
    %cst_68 = arith.constant 1.000000e+00 : f32
    %196 = vector.broadcast %cst_68 : f32 to vector<8x1xf32>
    %197 = arith.subf %196, %175 : vector<8x1xf32>
    %198 = vector.broadcast %197 : vector<8x1xf32> to vector<8x128xf32>
    %199 = arith.mulf %198, %115 : vector<8x128xf32>
    %200 = arith.addf %179, %199 : vector<8x128xf32>
    %c1_69 = arith.constant 1 : index
    %c0_70 = arith.constant 0 : index
    %c0_71 = arith.constant 0 : index
    %201 = vector.load %arg9[%c1_69, %c0_70, %c0_71] : memref<2x8x128xf32, #tpu.memory_space<vmem>>, vector<1x8x128xf32>
    %202 = vector.shape_cast %201 : vector<1x8x128xf32> to vector<8x128xf32>
    %203 = vector.shape_cast %200 : vector<8x128xf32> to vector<1x8x128xf32>
    tpu.vector_store %arg9[%c1_69, %c0_70, %c0_71], %203 {strides = array<i32>} : memref<2x8x128xf32, #tpu.memory_space<vmem>>, vector<1x8x128xf32>,
    %c2_i32 = arith.constant 2 : i32
    %c4_i32_72 = arith.constant 4 : i32
    %204 = arith.muli %arg0, %c4_i32_72 : i32
    %205 = arith.addi %204, %c2_i32 : i32
    %c7_i32_73 = arith.constant 7 : i32
    %206 = arith.subi %c7_i32_73, %205 : i32
    %c3_i32_74 = arith.constant 3 : i32
    %207 = arith.subi %c3_i32_74, %c2_i32 : i32
    %c0_75 = arith.constant 0 : index
    %c0_76 = arith.constant 0 : index
    %c0_77 = arith.constant 0 : index
    %208 = vector.load %arg9[%c0_75, %c0_76, %c0_77] : memref<2x8x128xf32, #tpu.memory_space<vmem>>, vector<1x8x128xf32>
    %209 = vector.shape_cast %208 : vector<1x8x128xf32> to vector<8x128xf32>
    %c1_78 = arith.constant 1 : index
    %c0_79 = arith.constant 0 : index
    %c0_80 = arith.constant 0 : index
    %210 = vector.load %arg9[%c1_78, %c0_79, %c0_80] : memref<2x8x128xf32, #tpu.memory_space<vmem>>, vector<1x8x128xf32>
    %211 = vector.shape_cast %210 : vector<1x8x128xf32> to vector<8x128xf32>
    %cst_81 = arith.constant dense<0.000000e+00> : vector<8x384xf32>
    %212 = tpu.matmul %209, %4, %cst_81 {dimension_numbers = #tpu.dot_dimension_numbers<[1], [0], [0], [1], [0, 0, 1, 1], [], []>} : vector<8x128xf32>, vector<128x384xf32>, vector<8x384xf32> -> vector<8x384xf32>
    %213 = vector.broadcast %8 : vector<1x384xf32> to vector<8x384xf32>
    %214 = arith.addf %212, %213 : vector<8x384xf32>
    %cst_82 = arith.constant dense<0.000000e+00> : vector<8x384xf32>
    %215 = tpu.matmul %211, %6, %cst_82 {dimension_numbers = #tpu.dot_dimension_numbers<[1], [0], [0], [1], [0, 0, 1, 1], [], []>} : vector<8x128xf32>, vector<128x384xf32>, vector<8x384xf32> -> vector<8x384xf32>
    %216 = vector.broadcast %10 : vector<1x384xf32> to vector<8x384xf32>
    %217 = arith.addf %215, %216 : vector<8x384xf32>
    %218 = arith.index_cast %c2_i32 : i32 to index
    %c0_83 = arith.constant 0 : index
    %c0_84 = arith.constant 0 : index
    %219 = vector.load %arg1[%218, %c0_83, %c0_84] : memref<4x8x384xf32, #tpu.memory_space<vmem>>, vector<1x8x384xf32>
    %220 = vector.shape_cast %219 : vector<1x8x384xf32> to vector<8x384xf32>
    %221 = vector.extract_strided_slice %220 {offsets = [0, 0], sizes = [8, 256], strides = [1, 1]} : vector<8x384xf32> to vector<8x256xf32>
    %222 = vector.extract_strided_slice %214 {offsets = [0, 0], sizes = [8, 256], strides = [1, 1]} : vector<8x384xf32> to vector<8x256xf32>
    %223 = arith.addf %221, %222 : vector<8x256xf32>
    %224 = arith.negf %223 : vector<8x256xf32>
    %225 = math.exp %224 : vector<8x256xf32>
    %cst_85 = arith.constant 1.000000e+00 : f32
    %226 = vector.broadcast %cst_85 : f32 to vector<8x256xf32>
    %227 = arith.addf %226, %225 : vector<8x256xf32>
    %228 = arith.divf %226, %227 : vector<8x256xf32>
    %229 = vector.extract_strided_slice %228 {offsets = [0, 0], sizes = [8, 128], strides = [1, 1]} : vector<8x256xf32> to vector<8x128xf32>
    %230 = vector.extract_strided_slice %228 {offsets = [0, 128], sizes = [8, 128], strides = [1, 1]} : vector<8x256xf32> to vector<8x128xf32>
    %231 = vector.extract_strided_slice %220 {offsets = [0, 256], sizes = [8, 128], strides = [1, 1]} : vector<8x384xf32> to vector<8x128xf32>
    %232 = vector.extract_strided_slice %214 {offsets = [0, 256], sizes = [8, 128], strides = [1, 1]} : vector<8x384xf32> to vector<8x128xf32>
    %233 = arith.mulf %229, %232 : vector<8x128xf32>
    %234 = arith.addf %231, %233 : vector<8x128xf32>
    %235 = math.tanh %234 : vector<8x128xf32>
    %cst_86 = arith.constant 1.000000e+00 : f32
    %236 = vector.broadcast %cst_86 : f32 to vector<8x128xf32>
    %237 = arith.subf %236, %230 : vector<8x128xf32>
    %238 = arith.mulf %237, %235 : vector<8x128xf32>
    %239 = arith.mulf %230, %209 : vector<8x128xf32>
    %240 = arith.addf %238, %239 : vector<8x128xf32>
    %241 = arith.index_cast %207 : i32 to index
    %c0_87 = arith.constant 0 : index
    %c0_88 = arith.constant 0 : index
    %242 = vector.load %arg2[%241, %c0_87, %c0_88] : memref<4x8x384xf32, #tpu.memory_space<vmem>>, vector<1x8x384xf32>
    %243 = vector.shape_cast %242 : vector<1x8x384xf32> to vector<8x384xf32>
    %244 = vector.extract_strided_slice %243 {offsets = [0, 0], sizes = [8, 256], strides = [1, 1]} : vector<8x384xf32> to vector<8x256xf32>
    %245 = vector.extract_strided_slice %217 {offsets = [0, 0], sizes = [8, 256], strides = [1, 1]} : vector<8x384xf32> to vector<8x256xf32>
    %246 = arith.addf %244, %245 : vector<8x256xf32>
    %247 = arith.negf %246 : vector<8x256xf32>
    %248 = math.exp %247 : vector<8x256xf32>
    %cst_89 = arith.constant 1.000000e+00 : f32
    %249 = vector.broadcast %cst_89 : f32 to vector<8x256xf32>
    %250 = arith.addf %249, %248 : vector<8x256xf32>
    %251 = arith.divf %249, %250 : vector<8x256xf32>
    %252 = vector.extract_strided_slice %251 {offsets = [0, 0], sizes = [8, 128], strides = [1, 1]} : vector<8x256xf32> to vector<8x128xf32>
    %253 = vector.extract_strided_slice %251 {offsets = [0, 128], sizes = [8, 128], strides = [1, 1]} : vector<8x256xf32> to vector<8x128xf32>
    %254 = vector.extract_strided_slice %243 {offsets = [0, 256], sizes = [8, 128], strides = [1, 1]} : vector<8x384xf32> to vector<8x128xf32>
    %255 = vector.extract_strided_slice %217 {offsets = [0, 256], sizes = [8, 128], strides = [1, 1]} : vector<8x384xf32> to vector<8x128xf32>
    %256 = arith.mulf %252, %255 : vector<8x128xf32>
    %257 = arith.addf %254, %256 : vector<8x128xf32>
    %258 = math.tanh %257 : vector<8x128xf32>
    %cst_90 = arith.constant 1.000000e+00 : f32
    %259 = vector.broadcast %cst_90 : f32 to vector<8x128xf32>
    %260 = arith.subf %259, %253 : vector<8x128xf32>
    %261 = arith.mulf %260, %258 : vector<8x128xf32>
    %262 = arith.mulf %253, %211 : vector<8x128xf32>
    %263 = arith.addf %261, %262 : vector<8x128xf32>
    %264 = vector.broadcast %205 : i32 to vector<8x1xi32>
    %265 = arith.cmpi slt, %264, %11 : vector<8x1xi32>
    %266 = arith.extui %265 : vector<8x1xi1> to vector<8x1xi32>
    %267 = arith.sitofp %266 : vector<8x1xi32> to vector<8x1xf32>
    %268 = vector.broadcast %206 : i32 to vector<8x1xi32>
    %269 = arith.cmpi slt, %268, %11 : vector<8x1xi32>
    %270 = arith.extui %269 : vector<8x1xi1> to vector<8x1xi32>
    %271 = arith.sitofp %270 : vector<8x1xi32> to vector<8x1xf32>
    %272 = vector.broadcast %267 : vector<8x1xf32> to vector<8x128xf32>
    %273 = arith.mulf %272, %240 : vector<8x128xf32>
    %274 = vector.broadcast %271 : vector<8x1xf32> to vector<8x128xf32>
    %275 = arith.mulf %274, %263 : vector<8x128xf32>
    %276 = arith.index_cast %c2_i32 : i32 to index
    %c0_91 = arith.constant 0 : index
    %c0_92 = arith.constant 0 : index
    %277 = vector.load %arg6[%276, %c0_91, %c0_92] : memref<4x8x128xf32, #tpu.memory_space<vmem>>, vector<1x8x128xf32>
    %278 = vector.shape_cast %277 : vector<1x8x128xf32> to vector<8x128xf32>
    %279 = vector.shape_cast %273 : vector<8x128xf32> to vector<1x8x128xf32>
    tpu.vector_store %arg6[%276, %c0_91, %c0_92], %279 {strides = array<i32>} : memref<4x8x128xf32, #tpu.memory_space<vmem>>, vector<1x8x128xf32>,
    %280 = arith.index_cast %207 : i32 to index
    %c0_93 = arith.constant 0 : index
    %c0_94 = arith.constant 0 : index
    %281 = vector.load %arg7[%280, %c0_93, %c0_94] : memref<4x8x128xf32, #tpu.memory_space<vmem>>, vector<1x8x128xf32>
    %282 = vector.shape_cast %281 : vector<1x8x128xf32> to vector<8x128xf32>
    %283 = vector.shape_cast %275 : vector<8x128xf32> to vector<1x8x128xf32>
    tpu.vector_store %arg7[%280, %c0_93, %c0_94], %283 {strides = array<i32>} : memref<4x8x128xf32, #tpu.memory_space<vmem>>, vector<1x8x128xf32>,
    %cst_95 = arith.constant 1.000000e+00 : f32
    %284 = vector.broadcast %cst_95 : f32 to vector<8x1xf32>
    %285 = arith.subf %284, %267 : vector<8x1xf32>
    %286 = vector.broadcast %285 : vector<8x1xf32> to vector<8x128xf32>
    %287 = arith.mulf %286, %209 : vector<8x128xf32>
    %288 = arith.addf %273, %287 : vector<8x128xf32>
    %c0_96 = arith.constant 0 : index
    %c0_97 = arith.constant 0 : index
    %c0_98 = arith.constant 0 : index
    %289 = vector.load %arg9[%c0_96, %c0_97, %c0_98] : memref<2x8x128xf32, #tpu.memory_space<vmem>>, vector<1x8x128xf32>
    %290 = vector.shape_cast %289 : vector<1x8x128xf32> to vector<8x128xf32>
    %291 = vector.shape_cast %288 : vector<8x128xf32> to vector<1x8x128xf32>
    tpu.vector_store %arg9[%c0_96, %c0_97, %c0_98], %291 {strides = array<i32>} : memref<2x8x128xf32, #tpu.memory_space<vmem>>, vector<1x8x128xf32>,
    %cst_99 = arith.constant 1.000000e+00 : f32
    %292 = vector.broadcast %cst_99 : f32 to vector<8x1xf32>
    %293 = arith.subf %292, %271 : vector<8x1xf32>
    %294 = vector.broadcast %293 : vector<8x1xf32> to vector<8x128xf32>
    %295 = arith.mulf %294, %211 : vector<8x128xf32>
    %296 = arith.addf %275, %295 : vector<8x128xf32>
    %c1_100 = arith.constant 1 : index
    %c0_101 = arith.constant 0 : index
    %c0_102 = arith.constant 0 : index
    %297 = vector.load %arg9[%c1_100, %c0_101, %c0_102] : memref<2x8x128xf32, #tpu.memory_space<vmem>>, vector<1x8x128xf32>
    %298 = vector.shape_cast %297 : vector<1x8x128xf32> to vector<8x128xf32>
    %299 = vector.shape_cast %296 : vector<8x128xf32> to vector<1x8x128xf32>
    tpu.vector_store %arg9[%c1_100, %c0_101, %c0_102], %299 {strides = array<i32>} : memref<2x8x128xf32, #tpu.memory_space<vmem>>, vector<1x8x128xf32>,
    %c3_i32_103 = arith.constant 3 : i32
    %c4_i32_104 = arith.constant 4 : i32
    %300 = arith.muli %arg0, %c4_i32_104 : i32
    %301 = arith.addi %300, %c3_i32_103 : i32
    %c7_i32_105 = arith.constant 7 : i32
    %302 = arith.subi %c7_i32_105, %301 : i32
    %c3_i32_106 = arith.constant 3 : i32
    %303 = arith.subi %c3_i32_106, %c3_i32_103 : i32
    %c0_107 = arith.constant 0 : index
    %c0_108 = arith.constant 0 : index
    %c0_109 = arith.constant 0 : index
    %304 = vector.load %arg9[%c0_107, %c0_108, %c0_109] : memref<2x8x128xf32, #tpu.memory_space<vmem>>, vector<1x8x128xf32>
    %305 = vector.shape_cast %304 : vector<1x8x128xf32> to vector<8x128xf32>
    %c1_110 = arith.constant 1 : index
    %c0_111 = arith.constant 0 : index
    %c0_112 = arith.constant 0 : index
    %306 = vector.load %arg9[%c1_110, %c0_111, %c0_112] : memref<2x8x128xf32, #tpu.memory_space<vmem>>, vector<1x8x128xf32>
    %307 = vector.shape_cast %306 : vector<1x8x128xf32> to vector<8x128xf32>
    %cst_113 = arith.constant dense<0.000000e+00> : vector<8x384xf32>
    %308 = tpu.matmul %305, %4, %cst_113 {dimension_numbers = #tpu.dot_dimension_numbers<[1], [0], [0], [1], [0, 0, 1, 1], [], []>} : vector<8x128xf32>, vector<128x384xf32>, vector<8x384xf32> -> vector<8x384xf32>
    %309 = vector.broadcast %8 : vector<1x384xf32> to vector<8x384xf32>
    %310 = arith.addf %308, %309 : vector<8x384xf32>
    %cst_114 = arith.constant dense<0.000000e+00> : vector<8x384xf32>
    %311 = tpu.matmul %307, %6, %cst_114 {dimension_numbers = #tpu.dot_dimension_numbers<[1], [0], [0], [1], [0, 0, 1, 1], [], []>} : vector<8x128xf32>, vector<128x384xf32>, vector<8x384xf32> -> vector<8x384xf32>
    %312 = vector.broadcast %10 : vector<1x384xf32> to vector<8x384xf32>
    %313 = arith.addf %311, %312 : vector<8x384xf32>
    %314 = arith.index_cast %c3_i32_103 : i32 to index
    %c0_115 = arith.constant 0 : index
    %c0_116 = arith.constant 0 : index
    %315 = vector.load %arg1[%314, %c0_115, %c0_116] : memref<4x8x384xf32, #tpu.memory_space<vmem>>, vector<1x8x384xf32>
    %316 = vector.shape_cast %315 : vector<1x8x384xf32> to vector<8x384xf32>
    %317 = vector.extract_strided_slice %316 {offsets = [0, 0], sizes = [8, 256], strides = [1, 1]} : vector<8x384xf32> to vector<8x256xf32>
    %318 = vector.extract_strided_slice %310 {offsets = [0, 0], sizes = [8, 256], strides = [1, 1]} : vector<8x384xf32> to vector<8x256xf32>
    %319 = arith.addf %317, %318 : vector<8x256xf32>
    %320 = arith.negf %319 : vector<8x256xf32>
    %321 = math.exp %320 : vector<8x256xf32>
    %cst_117 = arith.constant 1.000000e+00 : f32
    %322 = vector.broadcast %cst_117 : f32 to vector<8x256xf32>
    %323 = arith.addf %322, %321 : vector<8x256xf32>
    %324 = arith.divf %322, %323 : vector<8x256xf32>
    %325 = vector.extract_strided_slice %324 {offsets = [0, 0], sizes = [8, 128], strides = [1, 1]} : vector<8x256xf32> to vector<8x128xf32>
    %326 = vector.extract_strided_slice %324 {offsets = [0, 128], sizes = [8, 128], strides = [1, 1]} : vector<8x256xf32> to vector<8x128xf32>
    %327 = vector.extract_strided_slice %316 {offsets = [0, 256], sizes = [8, 128], strides = [1, 1]} : vector<8x384xf32> to vector<8x128xf32>
    %328 = vector.extract_strided_slice %310 {offsets = [0, 256], sizes = [8, 128], strides = [1, 1]} : vector<8x384xf32> to vector<8x128xf32>
    %329 = arith.mulf %325, %328 : vector<8x128xf32>
    %330 = arith.addf %327, %329 : vector<8x128xf32>
    %331 = math.tanh %330 : vector<8x128xf32>
    %cst_118 = arith.constant 1.000000e+00 : f32
    %332 = vector.broadcast %cst_118 : f32 to vector<8x128xf32>
    %333 = arith.subf %332, %326 : vector<8x128xf32>
    %334 = arith.mulf %333, %331 : vector<8x128xf32>
    %335 = arith.mulf %326, %305 : vector<8x128xf32>
    %336 = arith.addf %334, %335 : vector<8x128xf32>
    %337 = arith.index_cast %303 : i32 to index
    %c0_119 = arith.constant 0 : index
    %c0_120 = arith.constant 0 : index
    %338 = vector.load %arg2[%337, %c0_119, %c0_120] : memref<4x8x384xf32, #tpu.memory_space<vmem>>, vector<1x8x384xf32>
    %339 = vector.shape_cast %338 : vector<1x8x384xf32> to vector<8x384xf32>
    %340 = vector.extract_strided_slice %339 {offsets = [0, 0], sizes = [8, 256], strides = [1, 1]} : vector<8x384xf32> to vector<8x256xf32>
    %341 = vector.extract_strided_slice %313 {offsets = [0, 0], sizes = [8, 256], strides = [1, 1]} : vector<8x384xf32> to vector<8x256xf32>
    %342 = arith.addf %340, %341 : vector<8x256xf32>
    %343 = arith.negf %342 : vector<8x256xf32>
    %344 = math.exp %343 : vector<8x256xf32>
    %cst_121 = arith.constant 1.000000e+00 : f32
    %345 = vector.broadcast %cst_121 : f32 to vector<8x256xf32>
    %346 = arith.addf %345, %344 : vector<8x256xf32>
    %347 = arith.divf %345, %346 : vector<8x256xf32>
    %348 = vector.extract_strided_slice %347 {offsets = [0, 0], sizes = [8, 128], strides = [1, 1]} : vector<8x256xf32> to vector<8x128xf32>
    %349 = vector.extract_strided_slice %347 {offsets = [0, 128], sizes = [8, 128], strides = [1, 1]} : vector<8x256xf32> to vector<8x128xf32>
    %350 = vector.extract_strided_slice %339 {offsets = [0, 256], sizes = [8, 128], strides = [1, 1]} : vector<8x384xf32> to vector<8x128xf32>
    %351 = vector.extract_strided_slice %313 {offsets = [0, 256], sizes = [8, 128], strides = [1, 1]} : vector<8x384xf32> to vector<8x128xf32>
    %352 = arith.mulf %348, %351 : vector<8x128xf32>
    %353 = arith.addf %350, %352 : vector<8x128xf32>
    %354 = math.tanh %353 : vector<8x128xf32>
    %cst_122 = arith.constant 1.000000e+00 : f32
    %355 = vector.broadcast %cst_122 : f32 to vector<8x128xf32>
    %356 = arith.subf %355, %349 : vector<8x128xf32>
    %357 = arith.mulf %356, %354 : vector<8x128xf32>
    %358 = arith.mulf %349, %307 : vector<8x128xf32>
    %359 = arith.addf %357, %358 : vector<8x128xf32>
    %360 = vector.broadcast %301 : i32 to vector<8x1xi32>
    %361 = arith.cmpi slt, %360, %11 : vector<8x1xi32>
    %362 = arith.extui %361 : vector<8x1xi1> to vector<8x1xi32>
    %363 = arith.sitofp %362 : vector<8x1xi32> to vector<8x1xf32>
    %364 = vector.broadcast %302 : i32 to vector<8x1xi32>
    %365 = arith.cmpi slt, %364, %11 : vector<8x1xi32>
    %366 = arith.extui %365 : vector<8x1xi1> to vector<8x1xi32>
    %367 = arith.sitofp %366 : vector<8x1xi32> to vector<8x1xf32>
    %368 = vector.broadcast %363 : vector<8x1xf32> to vector<8x128xf32>
    %369 = arith.mulf %368, %336 : vector<8x128xf32>
    %370 = vector.broadcast %367 : vector<8x1xf32> to vector<8x128xf32>
    %371 = arith.mulf %370, %359 : vector<8x128xf32>
    %372 = arith.index_cast %c3_i32_103 : i32 to index
    %c0_123 = arith.constant 0 : index
    %c0_124 = arith.constant 0 : index
    %373 = vector.load %arg6[%372, %c0_123, %c0_124] : memref<4x8x128xf32, #tpu.memory_space<vmem>>, vector<1x8x128xf32>
    %374 = vector.shape_cast %373 : vector<1x8x128xf32> to vector<8x128xf32>
    %375 = vector.shape_cast %369 : vector<8x128xf32> to vector<1x8x128xf32>
    tpu.vector_store %arg6[%372, %c0_123, %c0_124], %375 {strides = array<i32>} : memref<4x8x128xf32, #tpu.memory_space<vmem>>, vector<1x8x128xf32>,
    %376 = arith.index_cast %303 : i32 to index
    %c0_125 = arith.constant 0 : index
    %c0_126 = arith.constant 0 : index
    %377 = vector.load %arg7[%376, %c0_125, %c0_126] : memref<4x8x128xf32, #tpu.memory_space<vmem>>, vector<1x8x128xf32>
    %378 = vector.shape_cast %377 : vector<1x8x128xf32> to vector<8x128xf32>
    %379 = vector.shape_cast %371 : vector<8x128xf32> to vector<1x8x128xf32>
    tpu.vector_store %arg7[%376, %c0_125, %c0_126], %379 {strides = array<i32>} : memref<4x8x128xf32, #tpu.memory_space<vmem>>, vector<1x8x128xf32>,
    %cst_127 = arith.constant 1.000000e+00 : f32
    %380 = vector.broadcast %cst_127 : f32 to vector<8x1xf32>
    %381 = arith.subf %380, %363 : vector<8x1xf32>
    %382 = vector.broadcast %381 : vector<8x1xf32> to vector<8x128xf32>
    %383 = arith.mulf %382, %305 : vector<8x128xf32>
    %384 = arith.addf %369, %383 : vector<8x128xf32>
    %c0_128 = arith.constant 0 : index
    %c0_129 = arith.constant 0 : index
    %c0_130 = arith.constant 0 : index
    %385 = vector.load %arg9[%c0_128, %c0_129, %c0_130] : memref<2x8x128xf32, #tpu.memory_space<vmem>>, vector<1x8x128xf32>
    %386 = vector.shape_cast %385 : vector<1x8x128xf32> to vector<8x128xf32>
    %387 = vector.shape_cast %384 : vector<8x128xf32> to vector<1x8x128xf32>
    tpu.vector_store %arg9[%c0_128, %c0_129, %c0_130], %387 {strides = array<i32>} : memref<2x8x128xf32, #tpu.memory_space<vmem>>, vector<1x8x128xf32>,
    %cst_131 = arith.constant 1.000000e+00 : f32
    %388 = vector.broadcast %cst_131 : f32 to vector<8x1xf32>
    %389 = arith.subf %388, %367 : vector<8x1xf32>
    %390 = vector.broadcast %389 : vector<8x1xf32> to vector<8x128xf32>
    %391 = arith.mulf %390, %307 : vector<8x128xf32>
    %392 = arith.addf %371, %391 : vector<8x128xf32>
    %c1_132 = arith.constant 1 : index
    %c0_133 = arith.constant 0 : index
    %c0_134 = arith.constant 0 : index
    %393 = vector.load %arg9[%c1_132, %c0_133, %c0_134] : memref<2x8x128xf32, #tpu.memory_space<vmem>>, vector<1x8x128xf32>
    %394 = vector.shape_cast %393 : vector<1x8x128xf32> to vector<8x128xf32>
    %395 = vector.shape_cast %392 : vector<8x128xf32> to vector<1x8x128xf32>
    tpu.vector_store %arg9[%c1_132, %c0_133, %c0_134], %395 {strides = array<i32>} : memref<2x8x128xf32, #tpu.memory_space<vmem>>, vector<1x8x128xf32>,
    %c4_i32_135 = arith.constant 4 : i32
    %c1_i32_136 = arith.constant 1 : i32
    %396 = arith.cmpi eq, %arg0, %c1_i32_136 : i32
    %397 = arith.extui %396 : i1 to i32
    %c0_i32_137 = arith.constant 0 : i32
    %398 = arith.cmpi ne, %397, %c0_i32_137 : i32
    scf.if %398 {
      %c0_138 = arith.constant 0 : index
      %c0_139 = arith.constant 0 : index
      %c0_140 = arith.constant 0 : index
      %399 = vector.load %arg9[%c0_138, %c0_139, %c0_140] : memref<2x8x128xf32, #tpu.memory_space<vmem>>, vector<2x8x128xf32>
      %c0_141 = arith.constant 0 : index
      %c0_142 = arith.constant 0 : index
      %c0_143 = arith.constant 0 : index
      %400 = vector.load %arg8[%c0_141, %c0_142, %c0_143] : memref<2x8x128xf32, #tpu.memory_space<vmem>>, vector<2x8x128xf32>
      tpu.vector_store %arg8[%c0_141, %c0_142, %c0_143], %399 {strides = array<i32>} : memref<2x8x128xf32, #tpu.memory_space<vmem>>, vector<2x8x128xf32>,
    } else {
    }
    return
  }
  func.func @transform_0(%arg0: i32) -> (i32, i32, i32) {
    %c0_i32 = arith.constant 0 : i32
    %c0_i32_0 = arith.constant 0 : i32
    %c0_i32_1 = arith.constant 0 : i32
    return %arg0, %c0_i32, %c0_i32_0 : i32, i32, i32
  }
  func.func @transform_1(%arg0: i32) -> (i32, i32, i32) {
    %c1_i32 = arith.constant 1 : i32
    %0 = arith.subi %c1_i32, %arg0 : i32
    %c0_i32 = arith.constant 0 : i32
    %c1_i32_0 = arith.constant 1 : i32
    %c0_i32_1 = arith.constant 0 : i32
    return %0, %c0_i32, %c1_i32_0 : i32, i32, i32
  }
  func.func @transform_2(%arg0: i32) -> (i32, i32) {
    %c0_i32 = arith.constant 0 : i32
    %c0_i32_0 = arith.constant 0 : i32
    %c0_i32_1 = arith.constant 0 : i32
    return %c0_i32, %c0_i32_0 : i32, i32
  }
  func.func @transform_3(%arg0: i32) -> (i32, i32, i32) {
    %c0_i32 = arith.constant 0 : i32
    %c0_i32_0 = arith.constant 0 : i32
    %c0_i32_1 = arith.constant 0 : i32
    %c0_i32_2 = arith.constant 0 : i32
    return %c0_i32, %c0_i32_0, %c0_i32_1 : i32, i32, i32
  }
  func.func @transform_4(%arg0: i32) -> (i32, i32, i32) {
    %c0_i32 = arith.constant 0 : i32
    %c0_i32_0 = arith.constant 0 : i32
    %c0_i32_1 = arith.constant 0 : i32
    %c0_i32_2 = arith.constant 0 : i32
    return %c0_i32, %c0_i32_0, %c0_i32_1 : i32, i32, i32
  }
  func.func @transform_5(%arg0: i32) -> (i32, i32, i32) {
    %c0_i32 = arith.constant 0 : i32
    %c0_i32_0 = arith.constant 0 : i32
    %c0_i32_1 = arith.constant 0 : i32
    return %arg0, %c0_i32, %c0_i32_0 : i32, i32, i32
  }
  func.func @transform_6(%arg0: i32) -> (i32, i32, i32) {
    %c1_i32 = arith.constant 1 : i32
    %0 = arith.subi %c1_i32, %arg0 : i32
    %c0_i32 = arith.constant 0 : i32
    %c0_i32_0 = arith.constant 0 : i32
    %c0_i32_1 = arith.constant 0 : i32
    return %0, %c0_i32, %c0_i32_0 : i32, i32, i32
  }
  func.func @transform_7(%arg0: i32) -> (i32, i32, i32) {
    %c0_i32 = arith.constant 0 : i32
    %c0_i32_0 = arith.constant 0 : i32
    %c0_i32_1 = arith.constant 0 : i32
    %c0_i32_2 = arith.constant 0 : i32
    return %c0_i32, %c0_i32_0, %c0_i32_1 : i32, i32, i32
  }
}

</mosaic_0001>

<bundles_post_ra>
// kernel: tpu_custom_call.1
= control target key start
LH: loop header
LB: loop body
LE: loop exit
PB: predicated region body
PF: predicated region fallthrough
CT: control target
= control target key end

     0   :  { %s4626_s0 = inlined_call_operand.hbm [shape: f32[8,8,768], index: 0, kind: input, shape index: {}]   ;;  %s4627_s1 = inlined_call_operand.hbm [shape: f32[8,8,768], index: 1, kind: input, shape index: {}]   ;;  %s4628_s2 = inlined_call_operand.vmem [shape: s32[8,1], index: 2, kind: input, shape index: {}]   ;;  %s4629_s3 = inlined_call_operand.hbm [shape: f32[2,128,384], index: 3, kind: input, shape index: {}]   ;;  %s4630_s4 = inlined_call_operand.vmem [shape: f32[2,1,384], index: 4, kind: input, shape index: {}]   ;;  %s4631_s5 = inlined_call_operand.hbm [shape: f32[8,8,128], index: 5, kind: output, shape index: {0}]   ;;  %s4632_s6 = inlined_call_operand.hbm [shape: f32[8,8,128], index: 6, kind: output, shape index: {1}]   ;;  %s4633_s7 = inlined_call_operand.hbm [shape: f32[2,8,128], index: 7, kind: output, shape index: {2}]  }
   0x1   :  { %4693 = sst [smem:[#allocation40_spill]] %s4626_s0 }
   0x2   :  { %4694 = sst [smem:[#allocation41_spill]] %s4629_s3 }
   0x3   :  { %4695 = sst [smem:[#allocation42_spill]] %s4631_s5 }
   0x4   :  { %4696 = sst [smem:[#allocation43_spill]] %s4632_s6 }
   0x5   :  { %4697 = sst [smem:[#allocation44_spill]] %s4633_s7 }
   0x6   :  { %13 = vsyncpa [#allocation4], 0 }
   0x7   :  { %15 = vsyncpa [#allocation4 + $0x1], 0 }
   0x8   :  { %16 = vsyncpa [#allocation7], 0 }
   0x9   :  { %18 = vsyncpa [#allocation7 + $0x1], 0 }
   0xa   :  { %19 = vsyncpa [#allocation5], 0 }
   0xb   :  { %21 = vsyncpa [#allocation5 + $0x1], 0 }
   0xc   :  { %22 = vsyncpa [#allocation11], 0 }
   0xd   :  { %24 = vsyncpa [#allocation11 + $0x1], 0  ;;  %s3674_s24 = smov 0   ;;  %s3676_s25 = smov 0  }
   0xe   :  { %s3678_s26 = smov 0   ;;  %s3680_s27 = smov 0  }
   0xf   :  { %s3682_s28 = smov 0   ;;  %s3684_s29 = smov 0  }
  0x10   :  { %s3686_s30 = smov 0  }
  0x11 LB: > { %4698 = sst [smem:[#allocation19_spill]] %s3604_s27  ;;  %s3708_s8 = sadd.s32 4294967295, %s3616_s30   ;;  %s3616_s30 = sphi %s3686_s30, %s4796_s30   ;;  %s3612_s29 = sphi %s3684_s29, %s4802_s29   ;;  %s3608_s28 = sphi %s3682_s28, %s4801_s28   ;;  %s3604_s27 = sphi %s3680_s27, %s4800_s27   ;;  %s3600_s26 = sphi %s3678_s26, %s4799_s26   ;;  %s3596_s25 = sphi %s3676_s25, %s4798_s25   ;;  %s3592_s24 = sphi %s3674_s24, %s4797_s24  }
  0x12   : > { %s4638_s9 = sadd.s32 4294967294, %s3616_s30   ;;  %p4634_p0 = scmp.eq.s32.totalorder %s3616_s30, 0 }
  0x13   : > { %p50_p1 = scmp.ne.s32.totalorder %s3608_s28, %s3604_s27  ;;  %p4635_p2 = scmp.eq.s32.totalorder %s3708_s8, 0 }
  0x14   : > { %p72_p3 = scmp.ne.s32.totalorder %s3600_s26, %s3596_s25  ;;  %p78_p4 = scmp.ne.s32.totalorder %s3596_s25, %s3592_s24 }
  0x15   : > { %p4637_p5 = scmp.eq.s32.totalorder %s3708_s8, 1  ;;  %p3721_p6 = por %p4635_p2, %p50_p1 }
  0x16   : > { %p3727_p7 = por %p72_p3, %p4634_p0  ;;  %p3733_p8 = por %p78_p4, %p4635_p2 }
  0x17   : > { %s4699_s10 = scalar_select %p3721_p6, 1, 0 }
  0x18   : > { %s4701_s12 = scalar_select %p3733_p8, 1, 0 }
  0x19   : > { %p171_p9 = scmp.eq.s32.totalorder %s4638_s9, 1  ;;  %p3741_p10 = por %p4637_p5, %p72_p3 }
  0x1a   : > { %p2228_p11 = scmp.ge.s32.totalorder %s3616_s30, 1  ;;  %p227_p0 = scmp.lt.s32.totalorder %s3616_s30, 3 }
  0x1b   : > { %s4702_s13 = scalar_select %p3741_p10, 1, 0 }
  0x1c   : > { %p3746_p12 = por %p171_p9, %p50_p1  ;;  %p3750_p13 = por %p171_p9, %p78_p4 }
  0x1d   : > { %4703 = sst [smem:[#allocation20_spill]] %s4702_s13  ;;  %p3756_p8 = pnand %p2228_p11, %p227_p0 }
  0x1e   : > { %s4704_s14 = scalar_select %p3746_p12, 1, 0 }
  0x1f   : > { %s4706_s15 = scalar_select %p3750_p13, 1, 0 }
  0x20   : > { %4705 = sst [smem:[#allocation21_spill]] %s4704_s14  ;;  %s3618_s17 = smov [#allocation8]  }
  0x21   : > { %4707 = sst [smem:[#allocation22_spill]] %s4706_s15  ;;  %s242_s18 = sshll.u32 %s3618_s17, 4  ;;  %s3760_s18 = int_to_ptr.vmem [resolvable:$true] %s242_s18 }
  0x22   : > { %s4708_s16 = scalar_select %p3756_p8, 1, 0 }
  0x23   : > { %p3188_p1 = pneg %p3756_p8  ;;  %p4640_p5 = scmp.lt.s32.totalorder %s3616_s30, 2 }
  0x24   : > { %p4709_p12 = scmp.eq.s32.totalorder %s3708_s8, 0  ;;  %s4712_s3 = sld [smem:[#allocation41_spill]] }
  0x25   : > { %p3776_p0 = pnand %p4640_p5, %p3727_p7 }
  0x26   : > { %p3768_p4 = pnand %p3188_p1, %p4709_p12 }
  0x27   : > { %s4711_s20 = scalar_select %p3776_p0, 1, 0 }
  0x28   : > { %p3369_p12 = pneg %p3768_p4 }
  0x2a   : > { %s3367_s24 = scalar_lea.hbm %s4712_s3, 12288 }
  0x2b   : > { %p3368_p11 = scmp.ne.s32.totalorder %s4712_s3, %s3367_s24  ;;  %p3374_p7 = scmp.lt.u32.totalorder %s3367_s24, %s4712_s3 }
  0x2d   : > { %p3370_p1 = pnand %p3369_p12, %p3368_p11 }
  0x2f   : > { %p3371_p3 = pneg %p3370_p1 }
  0x31   : > { %p3376_p2 = pnand %p3374_p7, %p3371_p3 }
  0x33   : > { %3379 = shalt.err (!%p3376_p2)
}
  0x34   : > { %s3380_s21 = scalar_lea.vmem %s3760_s18, 12288  ;;  %p3388_p10 = scmp.lt.s32.totalorder %s3760_s18, %s3760_s18 }
  0x35   : > { %p3381_p5 = scmp.ne.s32.totalorder %s3760_s18, %s3380_s21  ;;  %p3389_p6 = scmp.lt.s32.totalorder %s3380_s21, %s3380_s21 }
  0x37   : > { %p3383_p9 = pnand %p3381_p5, %p3369_p12  ;;  %p3390_p8 = por %p3389_p6, %p3388_p10 }
  0x39   : > { %p3384_p13 = pneg %p3383_p9 }
  0x3b   : > { %p3391_p0 = pnand %p3390_p8, %p3384_p13 }
  0x3d   : > { %3394 = shalt.err (!%p3391_p0)
}
  0x3e   : > { %s4646_s9 = smov 384   ;;  %s4648_s15 = smov 24  }
  0x3f   : > { %3191 = dma.hbm_to_vmem [thread:$0]  (!%p3768_p4), %s4712_s3, 12288, %s3760_s18, [#allocation7], %s4646_s9, %s4646_s9, %s4648_s15  }
  0x40   : > { %p4713_p2 = scmp.ne.s32.totalorder %s3612_s29, %s3608_s28  ;;  %p4714_p5 = scmp.eq.s32.totalorder %s3616_s30, 0 }
  0x41   : > { %p4716_p10 = scmp.eq.s32.totalorder %s3708_s8, 1  ;;  %s259_s24 = sand.u32 1, %s3612_s29  }
  0x42   : > { %p46_p6 = por %p4714_p5, %p4713_p2  ;;  %p4715_p8 = pmov %p4713_p2 }
  0x43   : > { %s3167_s17 = smul.u32 96, %s259_s24  ;;  %p4719_p3 = scmp.lt.s32.totalorder %s3616_s30, 2 }
  0x44   : > { %p3817_p13 = por %p4716_p10, %p4715_p8  ;;  %s3168_s11 = smul.u32 3072, %s3616_s30 }
  0x45   : > { %p3825_p0 = pnand %p4719_p3, %p46_p6  ;;  %s4721_s0 = sld [smem:[#allocation40_spill]] }
  0x46   : > { %s4717_s23 = scalar_select %p3817_p13, 1, 0 }
  0x47   : > { %s263_s22 = scalar_lea.vmem [#allocation3], %s3167_s17  ;;  %s3836_s15 = scalar_lea.sflag [#allocation4], %s259_s24 }
  0x48   : > { %4718 = sst [smem:[#allocation23_spill]] %s4717_s23  ;;  %s271_s9 = sshll.u32 %s263_s22, 4  ;;  %s3834_s9 = int_to_ptr.vmem [resolvable:$true] %s271_s9 }
  0x49   : > { %p3397_p9 = pneg %p3825_p0 }
  0x4b   : > { %s3832_s18 = scalar_lea.hbm %s4721_s0, %s3168_s11  ;;  %s3400_s21 = scalar_lea.hbm %s4721_s0, 6144 }
  0x4c   : > { %s3395_s3 = scalar_lea.hbm %s3832_s18, 1536  ;;  %p3401_p1 = scmp.lt.u32.totalorder %s3832_s18, %s4721_s0 }
  0x4d   : > { %p3396_p4 = scmp.ne.s32.totalorder %s3832_s18, %s3395_s3  ;;  %p3402_p7 = scmp.lt.u32.totalorder %s3400_s21, %s3395_s3 }
  0x4e   : > { %p3404_p5 = scmp.lt.u32.totalorder %s3395_s3, %s3832_s18 }
  0x4f   : > { %p3398_p11 = pnand %p3397_p9, %p3396_p4  ;;  %p3403_p2 = por %p3402_p7, %p3401_p1 }
  0x51   : > { %p3399_p12 = pneg %p3398_p11  ;;  %p3405_p6 = por %p3404_p5, %p3403_p2 }
  0x53   : > { %p3406_p8 = pnand %p3405_p6, %p3399_p12 }
  0x55   : > { %3409 = shalt.err (!%p3406_p8)
}
  0x56   : > { %s3410_s24 = scalar_lea.vmem %s3834_s9, 1536  ;;  %s3621_s17 = smov [#allocation3]  }
  0x57   : > { %p3411_p10 = scmp.ne.s32.totalorder %s3834_s9, %s3410_s24  ;;  %s3415_s22 = sshll.u32 %s3621_s17, 4  ;;  %s3416_s22 = int_to_ptr.vmem [resolvable:$false] %s3415_s22 }
  0x58   : > { %s3417_s7 = scalar_lea.vmem %s3416_s22, 3072  ;;  %p3418_p11 = scmp.lt.s32.totalorder %s3834_s9, %s3416_s22 }
  0x59   : > { %p3413_p3 = pnand %p3411_p10, %p3397_p9  ;;  %p3419_p1 = scmp.lt.s32.totalorder %s3417_s7, %s3410_s24 }
  0x5b   : > { %p3414_p4 = pneg %p3413_p3  ;;  %p3420_p7 = por %p3419_p1, %p3418_p11 }
  0x5d   : > { %p3421_p2 = pnand %p3420_p7, %p3414_p4 }
  0x5f   : > { %3424 = shalt.err (!%p3421_p2)
}
  0x60   : > { %s4655_s3 = smov 768   ;;  %s4722_s27 = smov 24  }
  0x61   : > { %s4723_s14 = smov 384   ;;  %s3868_s11 = sadd.s32 1, %s3616_s30  }
  0x62   : > { %3195 = dma.hbm_to_vmem [thread:$0]  (!%p3825_p0), %s3832_s18, 1536, %s3834_s9, %s3836_s15, %s4655_s3, %s4723_s14, %s4722_s27  }
  0x63   : > { %4724 = sst [smem:[#allocation24_spill]] %s3868_s11  ;;  %s60_s19 = ssub.s32 1, %s3616_s30 }
  0x64   : > { %s34_s21 = ssub.s32 %s3616_s30, %s3868_s11  ;;  %s61_s24 = ssub.s32 1, %s3868_s11 }
  0x65   : > { %p35_p9 = scmp.eq.s32.totalorder %s34_s21, 0  ;;  %s62_s17 = ssub.s32 %s60_s19, %s61_s24 }
  0x66   : > { %p63_p12 = scmp.eq.s32.totalorder %s62_s17, 0  ;;  %s65_s22 = sadd.s32 1, %s3600_s26 }
  0x67   : > { %s4725_s7 = sadd.s32 1, %s3612_s29  ;;  %s281_s23 = sand.u32 1, %s3616_s30  }
  0x68   : > { %s3878_s0 = scalar_select %p35_p9, %s3612_s29, %s4725_s7  }
  0x69   : > { %s3881_s5 = scalar_select %p63_p12, %s3600_s26, %s65_s22  }
  0x6a   : > { %s283_s9 = sand.u32 1, %s3600_s26   ;;  %s2234_s18 = smul.u32 3072, %s60_s19 }
  0x6b   : > { %s3169_s15 = smul.u32 96, %s283_s9  ;;  %s3892_s17 = scalar_lea.sflag [#allocation7], %s281_s23 }
  0x6c   : > { %s2134_s13 = scalar_lea.hbm %s4627_s1, %s2234_s18  ;;  %p4726_p5 = scmp.ne.s32.totalorder %s4711_s20, 0 }
  0x6d   : > { %s285_s11 = scalar_lea.vmem [#allocation6], %s3169_s15  ;;  %s3888_s24 = scalar_lea.hbm %s2134_s13, 384 }
  0x6e   : > { %s295_s21 = sshll.u32 %s285_s11, 4  ;;  %s3455_s22 = scalar_lea.hbm %s2134_s13, 1920  ;;  %s3890_s21 = int_to_ptr.vmem [resolvable:$true] %s295_s21 }
  0x6f   : > { %p3426_p0 = scmp.ne.s32.totalorder %s3888_s24, %s3455_s22  ;;  %p3427_p6 = pneg %p4726_p5 }
  0x70   : > { %s3430_s11 = scalar_lea.hbm %s4627_s1, 6144  ;;  %p3431_p3 = scmp.lt.u32.totalorder %s3888_s24, %s4627_s1 }
  0x71   : > { %p3428_p8 = pnand %p3427_p6, %p3426_p0  ;;  %p3432_p4 = scmp.lt.u32.totalorder %s3430_s11, %s3455_s22 }
  0x72   : > { %p3434_p1 = scmp.lt.u32.totalorder %s3455_s22, %s3888_s24 }
  0x73   : > { %p3429_p10 = pneg %p3428_p8  ;;  %p3433_p11 = por %p3432_p4, %p3431_p3 }
  0x75   : > { %p3435_p7 = por %p3434_p1, %p3433_p11 }
  0x77   : > { %p3436_p2 = pnand %p3435_p7, %p3429_p10 }
  0x79   : > { %3439 = shalt.err (!%p3436_p2)
}
  0x7a   : > { %s3440_s13 = scalar_lea.vmem %s3890_s21, 1536  ;;  %s3623_s23 = smov [#allocation6]  }
  0x7b   : > { %p3441_p9 = scmp.ne.s32.totalorder %s3890_s21, %s3440_s13  ;;  %s3445_s9 = sshll.u32 %s3623_s23, 4  ;;  %s3446_s9 = int_to_ptr.vmem [resolvable:$false] %s3445_s9 }
  0x7c   : > { %s3447_s15 = scalar_lea.vmem %s3446_s9, 3072  ;;  %p3448_p8 = scmp.lt.s32.totalorder %s3890_s21, %s3446_s9 }
  0x7d   : > { %p3443_p12 = pnand %p3441_p9, %p3427_p6  ;;  %p3449_p3 = scmp.lt.s32.totalorder %s3447_s15, %s3440_s13 }
  0x7f   : > { %p3444_p0 = pneg %p3443_p12  ;;  %p3450_p4 = por %p3449_p3, %p3448_p8 }
  0x81   : > { %p3451_p11 = pnand %p3450_p4, %p3444_p0 }
  0x83   : > { %3454 = shalt.err (!%p3451_p11)
}
  0x84   : > { %s4727_s18 = smov 768   ;;  %p4728_p6 = scmp.ne.s32.totalorder %s4708_s16, 0 }
  0x85   : > { %3198 = dma.hbm_to_vmem [thread:$0]  (!%p4726_p5), %s3888_s24, 1536, %s3890_s21, %s3892_s17, %s4727_s18, %s4723_s14, %s4722_s27  }
  0x86   : > { %307 = sbr.rel (%p4728_p6) target bundleno = 1388 (0x56c), region = 40 }
  0x8d   : > { %s3925_s22 = sand.u32 1, %s3608_s28   ;;  %p4729_p10 = scmp.ne.s32.totalorder %s4699_s10, 0 }
  0x8e   : > { %s3170_s6 = smul.u32 96, %s3925_s22  ;;  %s310_s3 = scalar_lea.sflag [#allocation4], %s3925_s22 }
  0x90   : > { %s3929_s11 = scalar_lea.vmem [#allocation3], %s3170_s6 }
  0x91   : > { %3567 = dma.done.wait (%p4729_p10), %s310_s3, 1536  }
  0x92   : > { %3569 = vsyncadd (%p4729_p10), %s310_s3, 4294965760  ;;  %s318_s16 = sand.u32 1, %s3708_s8   ;;  %s320_s20 = sand.u32 1, %s3596_s25  }
  0x93   : > { %s3171_s27 = smul.u32 96, %s320_s20  ;;  %s319_s14 = scalar_lea.sflag [#allocation7], %s318_s16 }
  0x94   : > { %p4730_p5 = scmp.ne.s32.totalorder %s4701_s12, 0 }
  0x95   : > { %s3939_s21 = scalar_lea.vmem [#allocation6], %s3171_s27 }
  0x96   : > { %3571 = dma.done.wait (%p4730_p5), %s319_s14, 1536  }
  0x97   : > { %3573 = vsyncadd (%p4730_p5), %s319_s14, 4294965760  ;;  %p4731_p1 = scmp.eq.s32.totalorder %s3708_s8, 0 }
  0x99   : > { %3575 = dma.done.wait (%p4731_p1), [#allocation7], 12288   ;;  %p4732_p7 = pmov %p4731_p1 }
  0x9a   : > { %s2237_s10 = sshll.u32 %s3925_s22, 5  ;;  %s2238_s24 = sshll.u32 %s320_s20, 5 }
  0x9b   : > { %3577 = vsyncadd (%p4732_p7), [#allocation7], 4294955008  ;;  %s3950_s17 = scalar_lea.vmem [#allocation9], %s2237_s10  ;;  %s3952_s19 = scalar_lea.vmem [#allocation10], %s2238_s24 }
  0x9c   : > { %p4733_p2 = scmp.ne.s32.totalorder %s3708_s8, 0 }
  0x9d   : > { %v3624_v0 = vmov (!%p4733_p2), 0.0  }
  0x9e   : > { %376 = sbr.rel (%p4733_p2) target bundleno = 165 (0xa5), region = 56  ;;  %377 = vst [vmem:[#allocation2] sm:$0xff] (!%p4733_p2), %v3624_v0  ;;  %378 = vst [vmem:[#allocation2 + $0x8] sm:$0xff] (!%p4733_p2), %v3624_v0 }
  0xa5 PF: > { %v380_v1 = vld [vmem:[#allocation8 + $0x8] sm:$0xff]  ;;  %v383_v2 = vld [vmem:[#allocation8 + $0x20] sm:$0xff]  ;;  %v382_v5 = vld [vmem:[#allocation8 + $0x18] sm:$0xff]  ;;  %v4663_v8 = vmov 0.0|0.0   ;;  %v4661_v9 = vmov 0.0   ;;  %vm3627_vm0 = vmmov 0  }
  0xa6   : > { %v379_v3 = vld [vmem:[#allocation8] sm:$0xff]  ;;  %v3956_v4 = vpack.c.bf16 %v383_v2, %v380_v1  ;;  %v386_v6 = vld [vmem:[#allocation8 + $0x38] sm:$0xff]  ;;  %v389_v7 = vld [vmem:[#allocation8 + $0x50] sm:$0xff]  ;;  %2751 = vmatprep.subr.bf16.mxu1 %v4663_v8  ;;  %565 = vmatprep.mubr.f32.mxu0 %v4661_v9  ;;  %v3628_v15 = vmov 0   ;;  %s4022_s12 = sshll.u32 %s3708_s8, 2  ;;  %p2290_p9 = scmp.ne.s32.totalorder %s3708_s8, 1 }
  0xa7   : > { %v3960_v10 = vpack.c.bf16 %v382_v5, %v379_v3  ;;  %v3962_v11 = vpack.c.bf16 %v389_v7, %v386_v6  ;;  %v385_v12 = vld [vmem:[#allocation8 + $0x30] sm:$0xff]  ;;  %v388_v13 = vld [vmem:[#allocation8 + $0x48] sm:$0xff]  ;;  %2471 = vmatprep.mubr.msk.f32.mxu1 %vm3627_vm0, %v4661_v9  ;;  %3280 = vset.pattern.permute.xlu0 %v3628_v15  ;;  %v395_v16 = vld [vmem:[#allocation8 + $0x80] sm:$0xff]  ;;  %s889_s7 = sadd.s32 1, %s4022_s12  ;;  %s481_s13 = ssub.s32 7, %s4022_s12 }
  0xa8   : > { %v392_v14 = vld [vmem:[#allocation8 + $0x68] sm:$0xff]  ;;  %2720 = vmatprep.subr.bf16.mxu0 %v3956_v4  ;;  %3281 = vset.pattern.permute.xlu1 %v3628_v15  ;;  %v3968_v17 = vpack.c.bf16 %v388_v13, %v385_v12  ;;  %v391_v19 = vld [vmem:[#allocation8 + $0x60] sm:$0xff]  ;;  %v394_v20 = vld [vmem:[#allocation8 + $0x78] sm:$0xff]  ;;  %s890_s15 = ssub.s32 6, %s4022_s12  ;;  %s1267_s18 = sadd.s32 2, %s4022_s12 }
  0xa9   : > { %2722 = vmatpush1.bf16.msra.mxu0 %v3960_v10  ;;  %v3971_v18 = vpack.c.bf16 %v395_v16, %v392_v14  ;;  %v398_v21 = vld [vmem:[#allocation8 + $0x98] sm:$0xff]  ;;  %v401_v22 = vld [vmem:[#allocation8 + $0xb0] sm:$0xff]  ;;  %v3974_v23 = vpack.c.bf16 %v394_v20, %v391_v19  ;;  %v400_v26 = vld [vmem:[#allocation8 + $0xa8] sm:$0xff]  ;;  %s1268_s6 = ssub.s32 5, %s4022_s12  ;;  %s1645_s3 = sadd.s32 3, %s4022_s12 }
  0xaa   : > { %2724 = vmatprep.subr.bf16.mxu0 %v3962_v11  ;;  %v3977_v24 = vpack.c.bf16 %v401_v22, %v398_v21  ;;  %v397_v25 = vld [vmem:[#allocation8 + $0x90] sm:$0xff]  ;;  %v404_v27 = vld [vmem:[#allocation8 + $0xc8] sm:$0xff]  ;;  %v407_v28 = vld [vmem:[#allocation8 + $0xe0] sm:$0xff]  ;;  %v848_v22 = vstv %s4022_s12  ;;  %s1646_s20 = ssub.s32 4, %s4022_s12 }
  0xab   : > { %v381_v29 = vld [vmem:[#allocation8 + $0x10] sm:$0xff]  ;;  %v384_v30 = vld [vmem:[#allocation8 + $0x28] sm:$0xff]  ;;  %v387_v32 = vld [vmem:[#allocation8 + $0x40] sm:$0xff]  ;;  %v3982_v33 = vpack.c.bf16 %v400_v26, %v397_v25  ;;  %v3985_v35 = vpack.c.bf16 %v407_v28, %v404_v27 }
  0xac   : > { %v3979_v31 = vpack.c.bf16 %v384_v30, %v381_v29  ;;  %v390_v34 = vld [vmem:[#allocation8 + $0x58] sm:$0xff]  ;;  %v403_v36 = vld [vmem:[#allocation8 + $0xc0] sm:$0xff]  ;;  %v413_v40 = vld [vmem:[#allocation8 + $0x110] sm:$0xff] }
  0xad   : > { %2726 = vmatpush1.bf16.msra.mxu0 %v3968_v17  ;;  %v406_v37 = vld [vmem:[#allocation8 + $0xd8] sm:$0xff]  ;;  %v3988_v39 = vpack.c.bf16 %v390_v34, %v387_v32  ;;  %v393_v41 = vld [vmem:[#allocation8 + $0x70] sm:$0xff]  ;;  %v396_v42 = vld [vmem:[#allocation8 + $0x88] sm:$0xff] }
  0xae   : > { %2728 = vmatprep.subr.bf16.mxu0 %v3971_v18  ;;  %v410_v38 = vld [vmem:[#allocation8 + $0xf8] sm:$0xff]  ;;  %2753 = vmatpush3.bf16.msra.mxu1 %v3979_v31  ;;  %v3992_v43 = vpack.c.bf16 %v406_v37, %v403_v36  ;;  %v409_v45 = vld [vmem:[#allocation8 + $0xf0] sm:$0xff]  ;;  %v412_v46 = vld [vmem:[#allocation8 + $0x108] sm:$0xff]  ;;  %v3998_v48 = vpack.c.bf16 %v396_v42, %v393_v41  ;;  %v1225_v41 = vstv %s889_s7  ;;  %v852_v42 = vstv %s481_s13 }
  0xaf   : > { %2754 = vmatprep.subr.bf16.mxu1 %v4663_v8  ;;  %v3995_v44 = vpack.c.bf16 %v413_v40, %v410_v38  ;;  %v416_v47 = vld [vmem:[#allocation8 + $0x128] sm:$0xff]  ;;  %v419_v49 = vld [vmem:[#allocation8 + $0x140] sm:$0xff]  ;;  %v402_v51 = vld [vmem:[#allocation8 + $0xb8] sm:$0xff]  ;;  %v4002_v52 = vpack.c.bf16 %v412_v46, %v409_v45 }
  0xb0   : > { %v399_v50 = vld [vmem:[#allocation8 + $0xa0] sm:$0xff]  ;;  %v4005_v53 = vpack.c.bf16 %v419_v49, %v416_v47  ;;  %v418_v55 = vld [vmem:[#allocation8 + $0x138] sm:$0xff]  ;;  %v425_v58 = vld [vmem:[#allocation8 + $0x170] sm:$0xff] }
  0xb1   : > { %2730 = vmatpush1.bf16.msra.mxu0 %v3974_v23  ;;  %4734 = vst [vmem:[#allocation25_spill] sm:$0xff] %v3995_v44  ;;  %4735 = vst [vmem:[#allocation26_spill] sm:$0xff] %v4002_v52  ;;  %v415_v54 = vld [vmem:[#allocation8 + $0x120] sm:$0xff]  ;;  %v422_v56 = vld [vmem:[#allocation8 + $0x158] sm:$0xff]  ;;  %v4008_v57 = vpack.c.bf16 %v402_v51, %v399_v50 }
  0xb2   : > { %2732 = vmatprep.subr.bf16.mxu0 %v3977_v24  ;;  %2756 = vmatpush3.bf16.msra.mxu1 %v3988_v39  ;;  %4736 = vst [vmem:[#allocation27_spill] sm:$0xff] %v4005_v53  ;;  %v405_v59 = vld [vmem:[#allocation8 + $0xd0] sm:$0xff]  ;;  %v408_v60 = vld [vmem:[#allocation8 + $0xe8] sm:$0xff]  ;;  %v4012_v61 = vpack.c.bf16 %v418_v55, %v415_v54  ;;  %v4015_v62 = vpack.c.bf16 %v425_v58, %v422_v56  ;;  %v432_v3 = vld [vmem:[#allocation8 + $0x1a0] sm:$0xff] }
  0xb3   : > { %2757 = vmatprep.subr.bf16.mxu1 %v4663_v8  ;;  %v421_v63 = vld [vmem:[#allocation8 + $0x150] sm:$0xff]  ;;  %v424_v0 = vld [vmem:[#allocation8 + $0x168] sm:$0xff]  ;;  %v4018_v2 = vpack.c.bf16 %v408_v60, %v405_v59  ;;  %v411_v5 = vld [vmem:[#allocation8 + $0x100] sm:$0xff]  ;;  %v1229_v59 = vstv %s890_s15 }
  0xb4   : > { %4737 = vst [vmem:[#allocation28_spill] sm:$0xff] %v4012_v61  ;;  %4738 = vst [vmem:[#allocation29_spill] sm:$0xff] %v4015_v62  ;;  %v429_v1 = vld [vmem:[#allocation8 + $0x188] sm:$0xff]  ;;  %v414_v6 = vld [vmem:[#allocation8 + $0x118] sm:$0xff]  ;;  %v4025_v7 = vpack.c.bf16 %v424_v0, %v421_v63 }
  0xb5   : > { %2734 = vmatpush1.bf16.msra.mxu0 %v3982_v33  ;;  %4739 = vst [vmem:[#allocation30_spill] sm:$0xff] %v4018_v2  ;;  %v4028_v12 = vpack.c.bf16 %v432_v3, %v429_v1  ;;  %v428_v13 = vld [vmem:[#allocation8 + $0x180] sm:$0xff]  ;;  %v431_v14 = vld [vmem:[#allocation8 + $0x198] sm:$0xff]  ;;  %v4031_v16 = vpack.c.bf16 %v414_v6, %v411_v5  ;;  %v438_v19 = vld [vmem:[#allocation8 + $0x1d0] sm:$0xff] }
  0xb6   : > { %2736 = vmatprep.subr.bf16.mxu0 %v3985_v35  ;;  %2759 = vmatpush3.bf16.msra.mxu1 %v3998_v48  ;;  %4740 = vst [vmem:[#allocation31_spill] sm:$0xff] %v4025_v7  ;;  %v435_v15 = vld [vmem:[#allocation8 + $0x1b8] sm:$0xff]  ;;  %v417_v20 = vld [vmem:[#allocation8 + $0x130] sm:$0xff]  ;;  %v420_v21 = vld [vmem:[#allocation8 + $0x148] sm:$0xff]  ;;  %v4040_v26 = vpack.c.bf16 %v431_v14, %v428_v13 }
  0xb7   : > { %2760 = vmatprep.subr.bf16.mxu1 %v4663_v8  ;;  %4741 = vst [vmem:[#allocation32_spill] sm:$0xff] %v4028_v12  ;;  %4742 = vst [vmem:[#allocation33_spill] sm:$0xff] %v4031_v16  ;;  %v4038_v25 = vld [vmem:[#allocation2] sm:$0xff]  ;;  %v4048_v29 = vpack.c.bf16 %v438_v19, %v435_v15  ;;  %v437_v30 = vld [vmem:[#allocation8 + $0x1c8] sm:$0xff]  ;;  %v4051_v36 = vpack.c.bf16 %v420_v21, %v417_v20  ;;  %v1603_v21 = vstv %s1267_s18 }
  0xb8   : > { %v434_v27 = vld [vmem:[#allocation8 + $0x1b0] sm:$0xff]  ;;  %v441_v32 = vld [vmem:[#allocation8 + $0x1e8] sm:$0xff]  ;;  %v444_v34 = vld [vmem:[#allocation8 + $0x200] sm:$0xff] }
  0xb9   : > { %2738 = vmatpush1.bf16.msra.mxu0 %v3992_v43  ;;  %v4045_v28 = vld [vmem:[%s4628_s2] sm:$0xff]  ;;  %4743 = vst [vmem:[#allocation34_spill] sm:$0xff] %v4051_v36  ;;  %v423_v37 = vld [vmem:[#allocation8 + $0x160] sm:$0xff]  ;;  %v426_v38 = vld [vmem:[#allocation8 + $0x178] sm:$0xff]  ;;  %v4059_v46 = vpack.c.bf16 %v437_v30, %v434_v27  ;;  %v4061_v47 = vpack.c.bf16 %v444_v34, %v441_v32 }
  0xba   : > { %2740 = vmatprep.subr.bf16.mxu0 %v3995_v44  ;;  %2762 = vmatpush3.bf16.msra.mxu1 %v4008_v57  ;;  %vm849_vm1 = vcmp.lt.s32.totalorder %v848_v22, %v4045_v28  ;;  %v440_v49 = vld [vmem:[#allocation8 + $0x1e0] sm:$0xff]  ;;  %v443_v50 = vld [vmem:[#allocation8 + $0x1f8] sm:$0xff]  ;;  %v4066_v54 = vpack.c.bf16 %v426_v38, %v423_v37  ;;  %vm1226_vm2 = vcmp.lt.s32.totalorder %v1225_v41, %v4045_v28  ;;  %v450_v55 = vld [vmem:[#allocation8 + $0x230] sm:$0xff] }
  0xbb   : > { %2763 = vmatprep.subr.bf16.mxu1 %v4663_v8  ;;  %v2249_v40 = vsel %vm849_vm1, 1.0, %v4661_v9  ;;  %v447_v51 = vld [vmem:[#allocation8 + $0x218] sm:$0xff]  ;;  %vm853_vm3 = vcmp.lt.s32.totalorder %v852_v42, %v4045_v28  ;;  %v430_v56 = vld [vmem:[#allocation8 + $0x190] sm:$0xff]  ;;  %v433_v58 = vld [vmem:[#allocation8 + $0x1a8] sm:$0xff]  ;;  %v4074_v0 = vpack.c.bf16 %v443_v50, %v440_v49  ;;  %v2262_v1 = vsel %vm1226_vm2, 1.0, %v4661_v9 }
  0xbc   : > { %858 = vperm.xlu0 %3280, %v2249_v40   ;;  %v871_v45 = vsub.f32 1.0, %v2249_v40  ;;  %4744 = vst [vmem:[#allocation35_spill] sm:$0xff] %v4066_v54  ;;  %v2250_v60 = vsel %vm853_vm3, 1.0, %v4661_v9  ;;  %v4078_v3 = vpack.c.bf16 %v450_v55, %v447_v51  ;;  %v446_v5 = vld [vmem:[#allocation8 + $0x210] sm:$0xff]  ;;  %v449_v6 = vld [vmem:[#allocation8 + $0x228] sm:$0xff]  ;;  %v4081_v14 = vpack.c.bf16 %v433_v58, %v430_v56  ;;  %v456_v15 = vld [vmem:[#allocation8 + $0x260] sm:$0xff] }
  0xbd   : > { %2742 = vmatpush1.bf16.msra.mxu0 %v4002_v52  ;;  %864 = vperm.xlu1 %3281, %v2250_v60   ;;  %v880_v63 = vsub.f32 1.0, %v2250_v60  ;;  %v453_v13 = vld [vmem:[#allocation8 + $0x248] sm:$0xff]  ;;  %vm1230_vm4 = vcmp.lt.s32.totalorder %v1229_v59, %v4045_v28  ;;  %v436_v19 = vld [vmem:[#allocation8 + $0x1c0] sm:$0xff]  ;;  %v439_v20 = vld [vmem:[#allocation8 + $0x1d8] sm:$0xff]  ;;  %v1249_v22 = vsub.f32 1.0, %v2262_v1  ;;  %v4089_v27 = vpack.c.bf16 %v449_v6, %v446_v5 }
  0xbe   : > { %2744 = vmatprep.subr.bf16.mxu0 %v4005_v53  ;;  %2765 = vmatpush3.bf16.msra.mxu1 %v4018_v2  ;;  %v452_v30 = vld [vmem:[#allocation8 + $0x240] sm:$0xff]  ;;  %v455_v32 = vld [vmem:[#allocation8 + $0x258] sm:$0xff]  ;;  %v2263_v37 = vsel %vm1230_vm4, 1.0, %v4661_v9  ;;  %v4096_v38 = vpack.c.bf16 %v456_v15, %v453_v13  ;;  %v462_v40 = vld [vmem:[#allocation8 + $0x290] sm:$0xff]  ;;  %v4099_v41 = vpack.c.bf16 %v439_v20, %v436_v19  ;;  %vm1604_vm5 = vcmp.lt.s32.totalorder %v1603_v21, %v4045_v28 }
  0xbf   : > { %2766 = vmatprep.subr.bf16.mxu1 %v4663_v8  ;;  %v459_v34 = vld [vmem:[#allocation8 + $0x278] sm:$0xff]  ;;  %v442_v42 = vld [vmem:[#allocation8 + $0x1f0] sm:$0xff]  ;;  %v1607_v49 = vstv %s1268_s6  ;;  %v1980_v50 = vstv %s1645_s3  ;;  %v1984_v51 = vstv %s1646_s20  ;;  %v1258_v55 = vsub.f32 1.0, %v2263_v37  ;;  %v465_v5 = vld [vmem:[#allocation8 + $0x2a8] sm:$0xff] }
  0xc0   : > { %874 = vperm.xlu0 %3280, %v871_v45   ;;  %v445_v45 = vld [vmem:[#allocation8 + $0x208] sm:$0xff]  ;;  %v4106_v56 = vpack.c.bf16 %v455_v32, %v452_v30  ;;  %v4108_v58 = vpack.c.bf16 %v462_v40, %v459_v34  ;;  %v2276_v60 = vsel %vm1604_vm5, 1.0, %v4661_v9  ;;  %vm1608_vm6 = vcmp.lt.s32.totalorder %v1607_v49, %v4045_v28  ;;  %v468_v6 = vld [vmem:[#allocation8 + $0x2c0] sm:$0xff]  ;;  %v451_v15 = vld [vmem:[#allocation8 + $0x238] sm:$0xff] }
  0xc1   : > { %2746 = vmatpush1.bf16.msra.mxu0 %v4012_v61  ;;  %883 = vperm.xlu1 %3281, %v880_v63   ;;  %v4110_v59 = vpack.c.bf16 %v445_v45, %v442_v42  ;;  %v458_v63 = vld [vmem:[#allocation8 + $0x270] sm:$0xff]  ;;  %vm1981_vm7 = vcmp.lt.s32.totalorder %v1980_v50, %v4045_v28  ;;  %vm1985_vm8 = vcmp.lt.s32.totalorder %v1984_v51, %v4045_v28  ;;  %v448_v13 = vld [vmem:[#allocation8 + $0x220] sm:$0xff]  ;;  %v1627_v19 = vsub.f32 1.0, %v2276_v60  ;;  %v467_v34 = vld [vmem:[#allocation8 + $0x2b8] sm:$0xff] }
  0xc2   : > { %2748 = vmatprep.subr.bf16.mxu0 %v4015_v62  ;;  %2768 = vmatpush3.bf16.msra.mxu1 %v4031_v16  ;;  %v2277_v21 = vsel %vm1608_vm6, 1.0, %v4661_v9  ;;  %v2288_v30 = vsel %vm1985_vm8, 1.0, %v4661_v9  ;;  %v4126_v28 = vpack.c.bf16 %v468_v6, %v465_v5  ;;  %v464_v32 = vld [vmem:[#allocation8 + $0x2a0] sm:$0xff]  ;;  %v4129_v40 = vpack.c.bf16 %v451_v15, %v448_v13  ;;  %v474_v42 = vld [vmem:[#allocation8 + $0x2f0] sm:$0xff]  ;;  %v457_v49 = vld [vmem:[#allocation8 + $0x268] sm:$0xff] }
  0xc3   : > { %2769 = vmatprep.subr.bf16.mxu1 %v4663_v8  ;;  %v454_v45 = vld [vmem:[#allocation8 + $0x250] sm:$0xff]  ;;  %v1636_v50 = vsub.f32 1.0, %v2277_v21  ;;  %v460_v6 = vld [vmem:[#allocation8 + $0x280] sm:$0xff]  ;;  %v463_v13 = vld [vmem:[#allocation8 + $0x298] sm:$0xff]  ;;  %v2012_v15 = vsub.f32 1.0, %v2288_v30 }
  0xc4   : > { %1235 = vperm.xlu0 %3280, %v2262_v1   ;;  %v461_v1 = vld [vmem:[#allocation8 + $0x288] sm:$0xff]  ;;  %v4139_v5 = vpack.c.bf16 %v457_v49, %v454_v45  ;;  %v475_v45 = vld [vmem:[#allocation8 + $0x2f8] sm:$0xff] }
  0xc5   : > { %2750 = vmatpush1.bf16.msra.mxu0 %v4025_v7  ;;  %1252 = vperm.xlu1 %3281, %v1249_v22   ;;  %v4120_v20 = vpack.c.bf16 %v461_v1, %v458_v63  ;;  %v2287_v22 = vsel %vm1981_vm7, 1.0, %v4661_v9  ;;  %v470_v63 = vld [vmem:[#allocation8 + $0x2d0] sm:$0xff]  ;;  %v473_v1 = vld [vmem:[#allocation8 + $0x2e8] sm:$0xff] }
  0xc6   : > { %2776 = vmatprep.subr.bf16.mxu0 %v4028_v12  ;;  %2771 = vmatpush3.bf16.msra.mxu1 %v4051_v36  ;;  %v3282_v51 = vpack.i.bf16 %v2288_v30, %v2287_v22  ;;  %v4151_v30 = vld [vmem:[#allocation2 + $0x8] sm:$0xff] }
  0xc7   : > { %2772 = vmatprep.subr.bf16.mxu1 %v4663_v8 }
  0xc8   : > { %566 = vmatmul.mubr.f32.vlgmr.msra.gmra.mrb[0].mxu0 %v4038_v25  ;;  %1241 = vperm.xlu0 %3280, %v2263_v37   ;;  %v471_v37 = vld [vmem:[#allocation8 + $0x2d8] sm:$0xff] }
  0xc9   : > { %2778 = vmatpush1.bf16.msra.mxu0 %v4040_v26  ;;  %722 = vmatprep.mubr.f32.mxu0 %v4661_v9 }
  0xca   : > { %2780 = vmatprep.subr.bf16.mxu0 %v4048_v29  ;;  %2774 = vmatpush3.bf16.msra.mxu1 %v4066_v54 }
  0xcb   : > { %2807 = vmatprep.subr.bf16.mxu1 %v4663_v8  ;;  %1261 = vperm.xlu1 %3281, %v1258_v55   ;;  %v4133_v55 = vpack.c.bf16 %v467_v34, %v464_v32  ;;  %v4147_v32 = vpack.c.bf16 %v463_v13, %v460_v6  ;;  %v466_v34 = vld [vmem:[#allocation8 + $0x2b0] sm:$0xff] }
  0xcc   : > { %1613 = vperm.xlu0 %3280, %v2276_v60   ;;  %v4136_v60 = vpack.c.bf16 %v474_v42, %v471_v37  ;;  %v469_v37 = vld [vmem:[#allocation8 + $0x2c8] sm:$0xff]  ;;  %v472_v42 = vld [vmem:[#allocation8 + $0x2e0] sm:$0xff] }
  0xcd   : > { %2782 = vmatpush1.bf16.msra.mxu0 %v4059_v46  ;;  %2472 = vmatmul.mubr.f32.vlgmr.msra.gmra.mrb[0].mxu1 %v4038_v25  ;;  %v4162_v49 = vpack.c.bf16 %v475_v45, %v472_v42 }
  0xce   : > { %2784 = vmatprep.subr.bf16.mxu0 %v4061_v47  ;;  %2809 = vmatpush3.bf16.msra.mxu1 %v4081_v14 }
  0xcf   : > { %2810 = vmatprep.subr.bf16.mxu1 %v4663_v8  ;;  %2506 = vmatprep.mubr.msk.f32.mxu1 %vm3627_vm0, %v4661_v9 }
  0xd0   : > { %1619 = vperm.xlu0 %3280, %v2277_v21   ;;  %1630 = vperm.xlu1 %3281, %v1627_v19   ;;  %v2003_v19 = vsub.f32 1.0, %v2287_v22  ;;  %v4143_v21 = vpack.c.bf16 %v473_v1, %v470_v63  ;;  %v4154_v22 = vpack.c.bf16 %v469_v37, %v466_v34  ;;  %v476_v1 = vld [vmem:[%s4630_s4] sm:$0x7]  ;;  %v799_v34 = vld [vmem:[%s3929_s11] sm:$0xff] }
  0xd1   : > { %2786 = vmatpush1.bf16.msra.mxu0 %v4074_v0 }
  0xd2   : > { %2788 = vmatprep.subr.bf16.mxu0 %v4078_v3  ;;  %2812 = vmatpush3.bf16.msra.mxu1 %v4099_v41 }
  0xd3   : > { %2813 = vmatprep.subr.bf16.mxu1 %v4663_v8 }
  0xd4   : > { %3283 = vperm.xlu0 %3280, %v3282_v51   ;;  %1639 = vperm.xlu1 %3281, %v1636_v50   ;;  %v486_v50 = vlaneseq }
  0xd5   : > { %2790 = vmatpush1.bf16.msra.mxu0 %v4089_v27 }
  0xd6   : > { %2792 = vmatprep.subr.bf16.mxu0 %v4096_v38  ;;  %2815 = vmatpush3.bf16.msra.mxu1 %v4110_v59  ;;  %v4201_v51 = vshrl.u32 %v486_v50, 7 }
  0xd7   : > { %2816 = vmatprep.subr.bf16.mxu1 %v4663_v8 }
  0xd8   : > { %2015 = vperm.xlu0 %3280, %v2012_v15   ;;  %2006 = vperm.xlu1 %3281, %v2003_v19   ;;  %v488_v63 = vsub.s32 0, %v4201_v51  ;;  %v492_v6 = vsub.s32 1, %v4201_v51 }
  0xd9   : > { %2794 = vmatpush1.bf16.msra.mxu0 %v4106_v56 }
  0xda   : > { %2796 = vmatprep.subr.bf16.mxu0 %v4108_v58  ;;  %2818 = vmatpush3.bf16.msra.mxu1 %v4129_v40  ;;  %v4208_v13 = vrot.slane %v476_v1, %v488_v63  ;;  %v4210_v15 = vrot.slane %v476_v1, %v492_v6 }
  0xdb   : > { %2819 = vmatprep.subr.bf16.mxu1 %v4663_v8 }
  0xdc   : > { %4745 = vst [vmem:[#allocation36_spill] sm:$0xff] %v4208_v13  ;;  %4746 = vst [vmem:[#allocation37_spill] sm:$0xff] %v4210_v15 }
  0xdd   : > { %2798 = vmatpush1.bf16.msra.mxu0 %v4120_v20 }
  0xde   : > { %2800 = vmatprep.subr.bf16.mxu0 %v4126_v28  ;;  %2821 = vmatpush3.bf16.msra.mxu1 %v4139_v5 }
  0xdf   : > { %2822 = vmatprep.subr.bf16.mxu1 %v4663_v8 }
  0xe1   : > { %2802 = vmatpush1.bf16.msra.mxu0 %v4133_v55 }
  0xe2   : > { %2804 = vmatprep.subr.bf16.mxu0 %v4136_v60  ;;  %2824 = vmatpush3.bf16.msra.mxu1 %v4147_v32 }
  0xe3   : > { %2825 = vmatprep.subr.bf16.mxu1 %v4663_v8 }
  0xe5   : > { %2806 = vmatpush1.bf16.msra.mxu0 %v4143_v21 }
  0xe6   : > { %2832 = vmatprep.subr.bf16.mxu0 %v3956_v4  ;;  %2827 = vmatpush3.bf16.msra.mxu1 %v4154_v22 }
  0xe7   : > { %2828 = vmatprep.subr.bf16.mxu1 %v4663_v8 }
  0xe8   : > { %723 = vmatmul.mubr.f32.vlgmr.msra.gmra.mrb[2].mxu0 %v4151_v30 }
  0xe9   : > { %2834 = vmatpush1.bf16.msra.mxu0 %v3960_v10  ;;  %957 = vmatprep.mubr.f32.mxu0 %v4661_v9 }
  0xea   : > { %2836 = vmatprep.subr.bf16.mxu0 %v3962_v11  ;;  %2830 = vmatpush3.bf16.msra.mxu1 %v4162_v49 }
  0xeb   : > { %2863 = vmatprep.subr.bf16.mxu1 %v4663_v8 }
  0xed   : > { %2838 = vmatpush1.bf16.msra.mxu0 %v3968_v17  ;;  %2507 = vmatmul.mubr.f32.vlgmr.msra.gmra.mrb[2].mxu1 %v4151_v30 }
  0xee   : > { %2840 = vmatprep.subr.bf16.mxu0 %v3971_v18  ;;  %2865 = vmatpush3.bf16.msra.mxu1 %v3979_v31 }
  0xef   : > { %2866 = vmatprep.subr.bf16.mxu1 %v4663_v8  ;;  %2541 = vmatprep.mubr.msk.f32.mxu1 %vm3627_vm0, %v4661_v9  ;;  %v800_v9 = vld [vmem:[%s3929_s11 + $0x8] sm:$0xff] }
  0xf1   : > { %2842 = vmatpush1.bf16.msra.mxu0 %v3974_v23 }
  0xf2   : > { %2844 = vmatprep.subr.bf16.mxu0 %v3977_v24  ;;  %2868 = vmatpush3.bf16.msra.mxu1 %v3988_v39 }
  0xf3   : > { %2869 = vmatprep.subr.bf16.mxu1 %v4663_v8 }
  0xf5   : > { %2846 = vmatpush1.bf16.msra.mxu0 %v3982_v33 }
  0xf6   : > { %2848 = vmatprep.subr.bf16.mxu0 %v3985_v35  ;;  %2871 = vmatpush3.bf16.msra.mxu1 %v3998_v48 }
  0xf7   : > { %2872 = vmatprep.subr.bf16.mxu1 %v4663_v8 }
  0xf9   : > { %2850 = vmatpush1.bf16.msra.mxu0 %v3992_v43 }
  0xfa   : > { %2852 = vmatprep.subr.bf16.mxu0 %v3995_v44  ;;  %2874 = vmatpush3.bf16.msra.mxu1 %v4008_v57 }
  0xfb   : > { %2875 = vmatprep.subr.bf16.mxu1 %v4663_v8 }
  0xfd   : > { %2854 = vmatpush1.bf16.msra.mxu0 %v4002_v52 }
  0xfe   : > { %2856 = vmatprep.subr.bf16.mxu0 %v4005_v53  ;;  %2877 = vmatpush3.bf16.msra.mxu1 %v4018_v2  ;;  %v496_v53 = vsub.s32 2, %v4201_v51  ;;  %v2244_v51 = vld [vmem:[%s3939_s21 + $0x48] sm:$0xff] }
  0xff   : > { %2878 = vmatprep.subr.bf16.mxu1 %v4663_v8 }
 0x101   : > { %2858 = vmatpush1.bf16.msra.mxu0 %v4012_v61 }
 0x102   : > { %2860 = vmatprep.subr.bf16.mxu0 %v4015_v62  ;;  %2880 = vmatpush3.bf16.msra.mxu1 %v4031_v16 }
 0x103   : > { %2881 = vmatprep.subr.bf16.mxu1 %v4663_v8 }
 0x105   : > { %2862 = vmatpush1.bf16.msra.mxu0 %v4025_v7 }
 0x106   : > { %2888 = vmatprep.subr.bf16.mxu0 %v4028_v12  ;;  %2883 = vmatpush3.bf16.msra.mxu1 %v4051_v36 }
 0x107   : > { %2884 = vmatprep.subr.bf16.mxu1 %v4663_v8 }
 0x10a   : > { %2886 = vmatpush3.bf16.msra.mxu1 %v4066_v54 }
 0x10b   : > { %2919 = vmatprep.subr.bf16.mxu1 %v4663_v8 }
 0x19b   : > { %v567_v19 = vpop.f32.mrb[0].mxu0 }
 0x19c   : > { %v568_v37 = vadd.f32 %v567_v19, %v4208_v13  ;;  %v569_v42 = vpop.f32.mrb[1].mxu0  ;;  %v4217_v19 = vrot.slane %v476_v1, %v496_v53 }
 0x19d   : > { %v570_v45 = vadd.f32 %v569_v42, %v4210_v15  ;;  %v2245_v15 = vld [vmem:[%s3939_s21 + $0x50] sm:$0xff] }
 0x19e   : > { %v802_v50 = vadd.f32 %v799_v34, %v568_v37  ;;  %4747 = vst [vmem:[#allocation38_spill] sm:$0xff] %v4217_v19  ;;  %v2240_v34 = vld [vmem:[%s4630_s4 + $0x3] sm:$0x7] }
 0x19f   : > { %v803_v12 = vadd.f32 %v800_v9, %v570_v45  ;;  %v4226_v37 = vrot.slane %v2240_v34, %v492_v6 }
 0x1a0   : > { %v2242_v8 = vmul.f32 -1.442695, %v802_v50  ;;  %v638_v54 = vpop.f32.mrb[0].mxu1 }
 0x1a1   : > { %v2243_v7 = vmul.f32 -1.442695, %v803_v12  ;;  %v2473_v62 = vpop.f32.mrb[1].mxu1  ;;  %v4223_v12 = vrot.slane %v2240_v34, %v488_v63 }
 0x1a2   : > { %3287 = vpow2.f32 %v2242_v8  ;;  %v639_v8 = vadd.f32 %v638_v54, %v4217_v19 }
 0x1a3   : > { %3289 = vpow2.f32 %v2243_v7  ;;  %4748 = vst [vmem:[#allocation39_spill] sm:$0xff] %v4223_v12  ;;  %v801_v7 = vld [vmem:[%s3929_s11 + $0x10] sm:$0xff] }
 0x1ac   : > { %v3288_v36 = vpop.eup %3287 }
 0x1ad   : > { %v810_v61 = vadd.f32 1.0, %v3288_v36  ;;  %v3290_v13 = vpop.eup %3289 }
 0x1ae   : > { %v811_v9 = vadd.f32 1.0, %v3290_v13 }
 0x1af   : > { %3291 = vrcp.f32 %v810_v61 }
 0x1b0   : > { %3293 = vrcp.f32 %v811_v9 }
 0x1b9   : > { %v3292_v62 = vpop.eup %3291 }
 0x1ba   : > { %v816_v36 = vmul.f32 %v3292_v62, %v639_v8  ;;  %v3294_v19 = vpop.eup %3293  ;;  %v859_v8 = vpop.permute.xlu0 %858 }
 0x1bb   : > { %v724_v61 = vpop.f32.mrb[2].mxu0  ;;  %v819_v62 = vsub.f32 1.0, %v3294_v19 }
 0x1bc   : > { %v817_v1 = vadd.f32 %v816_v36, %v801_v7  ;;  %v725_v42 = vadd.f32 %v724_v61, %v4223_v12  ;;  %v726_v45 = vpop.f32.mrb[3].mxu0  ;;  %v821_v7 = vmul.f32 %v3294_v19, %v4038_v25 }
 0x1bd   : > { %v727_v50 = vadd.f32 %v726_v45, %v4226_v37 }
 0x1be   : > { %3295 = vtanh.f32 %v817_v1  ;;  %v827_v13 = vadd.f32 %v2244_v51, %v725_v42  ;;  %v875_v1 = vpop.permute.xlu0 %874 }
 0x1bf   : > { %v828_v63 = vadd.f32 %v2245_v15, %v727_v50  ;;  %v877_v51 = vmul.f32 %v875_v1, %v4038_v25  ;;  %v4750_v25 = vmov 0.0  }
 0x1c0   : > { %v2247_v54 = vmul.f32 -1.442695, %v827_v13  ;;  %v795_v6 = vpop.f32.mrb[2].mxu1  ;;  %v4239_v13 = vrot.slane %v2240_v34, %v496_v53  ;;  %v2246_v34 = vld [vmem:[%s3939_s21 + $0x58] sm:$0xff] }
 0x1c1   : > { %v2248_v16 = vmul.f32 -1.442695, %v828_v63  ;;  %v2508_v9 = vpop.f32.mrb[3].mxu1 }
 0x1c2   : > { %3297 = vpow2.f32 %v2247_v54  ;;  %v796_v54 = vadd.f32 %v795_v6, %v4239_v13 }
 0x1c3   : > { %3299 = vpow2.f32 %v2248_v16  ;;  %v4749_v16 = vmov 0.0|0.0  }
 0x1c8   : > { %v3296_v52 = vpop.eup %3295 }
 0x1c9   : > { %v820_v36 = vmul.f32 %v3296_v52, %v819_v62 }
 0x1cb   : > { %v822_v61 = vadd.f32 %v821_v7, %v820_v36 }
 0x1cc   : > { %v3298_v45 = vpop.eup %3297 }
 0x1cd   : > { %v861_v42 = vmul.f32 %v859_v8, %v822_v61  ;;  %v835_v15 = vadd.f32 1.0, %v3298_v45  ;;  %v3300_v52 = vpop.eup %3299  ;;  %v865_v8 = vpop.permute.xlu1 %864 }
 0x1ce   : > { %v836_v19 = vadd.f32 1.0, %v3300_v52  ;;  %v4752_v52 = vld [vmem:[#allocation33_spill] sm:$0xff] }
 0x1cf   : > { %868 = vst [vmem:[%s3950_s17] sm:$0xff] %v861_v42  ;;  %v4235_v50 = vadd.f32 %v877_v51, %v861_v42  ;;  %3301 = vrcp.f32 %v835_v15 }
 0x1d0   : > { %3303 = vrcp.f32 %v836_v19  ;;  %v4753_v19 = vld [vmem:[#allocation27_spill] sm:$0xff] }
 0x1d1   : > { %958 = vmatmul.mubr.f32.vlgmr.msra.gmra.mrb[4].mxu0 %v4235_v50  ;;  %2542 = vmatmul.mubr.f32.vlgmr.msra.gmra.mrb[4].mxu1 %v4235_v50  ;;  %v884_v1 = vpop.permute.xlu1 %883 }
 0x1d2   : > { %2890 = vmatpush1.bf16.msra.mxu0 %v4040_v26  ;;  %2921 = vmatpush3.bf16.msra.mxu1 %v4081_v14  ;;  %v886_v51 = vmul.f32 %v884_v1, %v4151_v30 }
 0x1d3   : > { %2892 = vmatprep.subr.bf16.mxu0 %v4048_v29  ;;  %2922 = vmatprep.subr.bf16.mxu1 %v4749_v16 }
 0x1d4   : > { %1098 = vmatprep.mubr.f32.mxu0 %v4750_v25  ;;  %2576 = vmatprep.mubr.msk.f32.mxu1 %vm3627_vm0, %v4750_v25 }
 0x1d6   : > { %2894 = vmatpush1.bf16.msra.mxu0 %v4059_v46  ;;  %2924 = vmatpush3.bf16.msra.mxu1 %v4099_v41 }
 0x1d7   : > { %2896 = vmatprep.subr.bf16.mxu0 %v4061_v47  ;;  %2925 = vmatprep.subr.bf16.mxu1 %v4749_v16 }
 0x1d9   : > { %v3302_v53 = vpop.eup %3301 }
 0x1da   : > { %v841_v63 = vmul.f32 %v3302_v53, %v796_v54  ;;  %2898 = vmatpush1.bf16.msra.mxu0 %v4074_v0  ;;  %2927 = vmatpush3.bf16.msra.mxu1 %v4110_v59  ;;  %v3304_v9 = vpop.eup %3303  ;;  %v4754_v54 = vld [vmem:[#allocation28_spill] sm:$0xff]  ;;  %v4755_v53 = vld [vmem:[#allocation34_spill] sm:$0xff] }
 0x1db   : > { %2900 = vmatprep.subr.bf16.mxu0 %v4078_v3  ;;  %2928 = vmatprep.subr.bf16.mxu1 %v4749_v16  ;;  %v844_v62 = vsub.f32 1.0, %v3304_v9  ;;  %v846_v36 = vmul.f32 %v3304_v9, %v4151_v30  ;;  %v4751_v30 = vld [vmem:[#allocation26_spill] sm:$0xff]  ;;  %v4759_v9 = vld [vmem:[#allocation32_spill] sm:$0xff] }
 0x1dc   : > { %v842_v6 = vadd.f32 %v2246_v34, %v841_v63  ;;  %v4756_v34 = vld [vmem:[#allocation29_spill] sm:$0xff]  ;;  %v4757_v63 = vld [vmem:[#allocation31_spill] sm:$0xff] }
 0x1de   : > { %3305 = vtanh.f32 %v842_v6  ;;  %2902 = vmatpush1.bf16.msra.mxu0 %v4089_v27  ;;  %2930 = vmatpush3.bf16.msra.mxu1 %v4129_v40  ;;  %v4758_v6 = vld [vmem:[#allocation35_spill] sm:$0xff] }
 0x1df   : > { %2904 = vmatprep.subr.bf16.mxu0 %v4096_v38  ;;  %2931 = vmatprep.subr.bf16.mxu1 %v4749_v16 }
 0x1e2   : > { %2906 = vmatpush1.bf16.msra.mxu0 %v4106_v56  ;;  %2933 = vmatpush3.bf16.msra.mxu1 %v4139_v5 }
 0x1e3   : > { %2908 = vmatprep.subr.bf16.mxu0 %v4108_v58  ;;  %2934 = vmatprep.subr.bf16.mxu1 %v4749_v16 }
 0x1e6   : > { %2910 = vmatpush1.bf16.msra.mxu0 %v4120_v20  ;;  %2936 = vmatpush3.bf16.msra.mxu1 %v4147_v32 }
 0x1e7   : > { %2912 = vmatprep.subr.bf16.mxu0 %v4126_v28  ;;  %2937 = vmatprep.subr.bf16.mxu1 %v4749_v16 }
 0x1e8   : > { %v3306_v7 = vpop.eup %3305 }
 0x1e9   : > { %v845_v61 = vmul.f32 %v3306_v7, %v844_v62  ;;  %v2252_v62 = vld [vmem:[%s3929_s11 + $0x18] sm:$0xff] }
 0x1ea   : > { %2914 = vmatpush1.bf16.msra.mxu0 %v4133_v55  ;;  %2939 = vmatpush3.bf16.msra.mxu1 %v4154_v22 }
 0x1eb   : > { %v847_v45 = vadd.f32 %v846_v36, %v845_v61  ;;  %2916 = vmatprep.subr.bf16.mxu0 %v4136_v60  ;;  %2940 = vmatprep.subr.bf16.mxu1 %v4749_v16  ;;  %v4760_v36 = vld [vmem:[#allocation36_spill] sm:$0xff] }
 0x1ed   : > { %v867_v42 = vmul.f32 %v865_v8, %v847_v45 }
 0x1ee   : > { %2918 = vmatpush1.bf16.msra.mxu0 %v4143_v21  ;;  %2942 = vmatpush3.bf16.msra.mxu1 %v4162_v49 }
 0x1ef   : > { %2251 = vst [vmem:[%s3952_s19 + $0x18] sm:$0xff] %v867_v42  ;;  %v4279_v15 = vadd.f32 %v886_v51, %v867_v42  ;;  %2944 = vmatprep.subr.bf16.mxu0 %v3956_v4  ;;  %2975 = vmatprep.subr.bf16.mxu1 %v4749_v16  ;;  %v4761_v51 = vld [vmem:[#allocation37_spill] sm:$0xff] }
 0x1f1   : > { %1099 = vmatmul.mubr.f32.vlgmr.msra.gmra.mrb[6].mxu0 %v4279_v15  ;;  %2577 = vmatmul.mubr.f32.vlgmr.msra.gmra.mrb[6].mxu1 %v4279_v15 }
 0x1f2   : > { %2946 = vmatpush1.bf16.msra.mxu0 %v3960_v10  ;;  %2977 = vmatpush3.bf16.msra.mxu1 %v3979_v31 }
 0x1f3   : > { %2948 = vmatprep.subr.bf16.mxu0 %v3962_v11  ;;  %2978 = vmatprep.subr.bf16.mxu1 %v4749_v16 }
 0x1f4   : > { %1335 = vmatprep.mubr.f32.mxu0 %v4750_v25  ;;  %2611 = vmatprep.mubr.msk.f32.mxu1 %vm3627_vm0, %v4750_v25 }
 0x1f6   : > { %2950 = vmatpush1.bf16.msra.mxu0 %v3968_v17  ;;  %2980 = vmatpush3.bf16.msra.mxu1 %v3988_v39 }
 0x1f7   : > { %2952 = vmatprep.subr.bf16.mxu0 %v3971_v18  ;;  %2981 = vmatprep.subr.bf16.mxu1 %v4749_v16 }
 0x1fa   : > { %2954 = vmatpush1.bf16.msra.mxu0 %v3974_v23  ;;  %2983 = vmatpush3.bf16.msra.mxu1 %v3998_v48 }
 0x1fb   : > { %2956 = vmatprep.subr.bf16.mxu0 %v3977_v24  ;;  %2984 = vmatprep.subr.bf16.mxu1 %v4749_v16 }
 0x1fe   : > { %2958 = vmatpush1.bf16.msra.mxu0 %v3982_v33  ;;  %2986 = vmatpush3.bf16.msra.mxu1 %v4008_v57 }
 0x1ff   : > { %2960 = vmatprep.subr.bf16.mxu0 %v3985_v35  ;;  %2987 = vmatprep.subr.bf16.mxu1 %v4749_v16 }
 0x202   : > { %2962 = vmatpush1.bf16.msra.mxu0 %v3992_v43  ;;  %2989 = vmatpush3.bf16.msra.mxu1 %v4018_v2 }
 0x203   : > { %2964 = vmatprep.subr.bf16.mxu0 %v3995_v44  ;;  %2990 = vmatprep.subr.bf16.mxu1 %v4749_v16  ;;  %v4762_v44 = vld [vmem:[#allocation38_spill] sm:$0xff] }
 0x206   : > { %2966 = vmatpush1.bf16.msra.mxu0 %v4751_v30  ;;  %2992 = vmatpush3.bf16.msra.mxu1 %v4752_v52 }
 0x207   : > { %2968 = vmatprep.subr.bf16.mxu0 %v4753_v19  ;;  %2993 = vmatprep.subr.bf16.mxu1 %v4749_v16 }
 0x20a   : > { %2970 = vmatpush1.bf16.msra.mxu0 %v4754_v54  ;;  %2995 = vmatpush3.bf16.msra.mxu1 %v4755_v53  ;;  %v2253_v53 = vld [vmem:[%s3929_s11 + $0x20] sm:$0xff] }
 0x20b   : > { %2972 = vmatprep.subr.bf16.mxu0 %v4756_v34  ;;  %2996 = vmatprep.subr.bf16.mxu1 %v4749_v16 }
 0x20e   : > { %2974 = vmatpush1.bf16.msra.mxu0 %v4757_v63  ;;  %2998 = vmatpush3.bf16.msra.mxu1 %v4758_v6 }
 0x20f   : > { %3000 = vmatprep.subr.bf16.mxu0 %v4759_v9  ;;  %3031 = vmatprep.subr.bf16.mxu1 %v4749_v16 }
 0x2a4   : > { %v959_v8 = vpop.f32.mrb[4].mxu0  ;;  %v1030_v7 = vpop.f32.mrb[4].mxu1 }
 0x2a5   : > { %v960_v61 = vadd.f32 %v959_v8, %v4760_v36  ;;  %v961_v45 = vpop.f32.mrb[5].mxu0  ;;  %v2543_v1 = vpop.f32.mrb[5].mxu1  ;;  %v1031_v8 = vadd.f32 %v1030_v7, %v4762_v44  ;;  %v2254_v36 = vld [vmem:[%s3929_s11 + $0x28] sm:$0xff] }
 0x2a6   : > { %v962_v42 = vadd.f32 %v961_v45, %v4761_v51 }
 0x2a7   : > { %v1179_v34 = vadd.f32 %v2252_v62, %v960_v61  ;;  %v2257_v61 = vld [vmem:[%s3939_s21 + $0x30] sm:$0xff] }
 0x2a8   : > { %v1180_v63 = vadd.f32 %v2253_v53, %v962_v42 }
 0x2a9   : > { %v2255_v54 = vmul.f32 -1.442695, %v1179_v34 }
 0x2aa   : > { %v2256_v6 = vmul.f32 -1.442695, %v1180_v63 }
 0x2ab   : > { %3307 = vpow2.f32 %v2255_v54 }
 0x2ac   : > { %3309 = vpow2.f32 %v2256_v6 }
 0x2b5   : > { %v3308_v9 = vpop.eup %3307 }
 0x2b6   : > { %v1187_v19 = vadd.f32 1.0, %v3308_v9  ;;  %v3310_v52 = vpop.eup %3309 }
 0x2b7   : > { %v1188_v30 = vadd.f32 1.0, %v3310_v52  ;;  %v2258_v52 = vld [vmem:[%s3939_s21 + $0x38] sm:$0xff] }
 0x2b8   : > { %3311 = vrcp.f32 %v1187_v19 }
 0x2b9   : > { %3313 = vrcp.f32 %v1188_v30 }
 0x2c2   : > { %v3312_v1 = vpop.eup %3311 }
 0x2c3   : > { %v1193_v2 = vmul.f32 %v3312_v1, %v1031_v8  ;;  %v3314_v7 = vpop.eup %3313 }
 0x2c4   : > { %v1100_v62 = vpop.f32.mrb[6].mxu0  ;;  %v1171_v34 = vpop.f32.mrb[6].mxu1  ;;  %v1196_v30 = vsub.f32 1.0, %v3314_v7 }
 0x2c5   : > { %v1194_v45 = vadd.f32 %v2254_v36, %v1193_v2  ;;  %v1101_v54 = vadd.f32 %v1100_v62, %v4223_v12  ;;  %v1102_v53 = vpop.f32.mrb[7].mxu0  ;;  %v2578_v63 = vpop.f32.mrb[7].mxu1  ;;  %v1198_v2 = vmul.f32 %v3314_v7, %v4235_v50 }
 0x2c6   : > { %v1103_v6 = vadd.f32 %v1102_v53, %v4226_v37  ;;  %v1253_v36 = vpop.permute.xlu1 %1252  ;;  %v1236_v12 = vpop.permute.xlu0 %1235 }
 0x2c7   : > { %3315 = vtanh.f32 %v1194_v45  ;;  %v1204_v19 = vadd.f32 %v2257_v61, %v1101_v54  ;;  %v1255_v45 = vmul.f32 %v1253_v36, %v4235_v50  ;;  %v1172_v50 = vadd.f32 %v1171_v34, %v4239_v13 }
 0x2c8   : > { %v1205_v42 = vadd.f32 %v2258_v52, %v1103_v6 }
 0x2c9   : > { %v2260_v9 = vmul.f32 -1.442695, %v1204_v19  ;;  %v2259_v19 = vld [vmem:[%s3939_s21 + $0x40] sm:$0xff] }
 0x2ca   : > { %v2261_v8 = vmul.f32 -1.442695, %v1205_v42  ;;  %v1262_v36 = vpop.permute.xlu1 %1261 }
 0x2cb   : > { %3317 = vpow2.f32 %v2260_v9 }
 0x2cc   : > { %3319 = vpow2.f32 %v2261_v8 }
 0x2d1   : > { %v3316_v1 = vpop.eup %3315 }
 0x2d2   : > { %v1197_v44 = vmul.f32 %v3316_v1, %v1196_v30 }
 0x2d4   : > { %v1199_v62 = vadd.f32 %v1198_v2, %v1197_v44  ;;  %v1242_v2 = vpop.permute.xlu0 %1241 }
 0x2d5   : > { %v3318_v63 = vpop.eup %3317 }
 0x2d6   : > { %v1238_v61 = vmul.f32 %v1236_v12, %v1199_v62  ;;  %v1212_v54 = vadd.f32 1.0, %v3318_v63  ;;  %v3320_v44 = vpop.eup %3319  ;;  %v1264_v62 = vmul.f32 %v1262_v36, %v4279_v15  ;;  %v2268_v36 = vld [vmem:[%s3929_s11 + $0x40] sm:$0xff] }
 0x2d7   : > { %v1213_v12 = vadd.f32 1.0, %v3320_v44 }
 0x2d8   : > { %2264 = vst [vmem:[%s3950_s17 + $0x8] sm:$0xff] %v1238_v61  ;;  %v4333_v53 = vadd.f32 %v1255_v45, %v1238_v61  ;;  %3321 = vrcp.f32 %v1212_v54 }
 0x2d9   : > { %3323 = vrcp.f32 %v1213_v12 }
 0x2da   : > { %1336 = vmatmul.mubr.f32.vlgmr.msra.gmra.mrb[8].mxu0 %v4333_v53  ;;  %2612 = vmatmul.mubr.f32.vlgmr.msra.gmra.mrb[8].mxu1 %v4333_v53 }
 0x2db   : > { %3002 = vmatpush1.bf16.msra.mxu0 %v4040_v26  ;;  %3033 = vmatpush3.bf16.msra.mxu1 %v4081_v14 }
 0x2dc   : > { %3004 = vmatprep.subr.bf16.mxu0 %v4048_v29  ;;  %3034 = vmatprep.subr.bf16.mxu1 %v4749_v16 }
 0x2dd   : > { %1476 = vmatprep.mubr.f32.mxu0 %v4750_v25  ;;  %2646 = vmatprep.mubr.msk.f32.mxu1 %vm3627_vm0, %v4750_v25 }
 0x2df   : > { %3006 = vmatpush1.bf16.msra.mxu0 %v4059_v46  ;;  %3036 = vmatpush3.bf16.msra.mxu1 %v4099_v41 }
 0x2e0   : > { %3008 = vmatprep.subr.bf16.mxu0 %v4061_v47  ;;  %3037 = vmatprep.subr.bf16.mxu1 %v4749_v16 }
 0x2e2   : > { %v3322_v6 = vpop.eup %3321 }
 0x2e3   : > { %v1218_v52 = vmul.f32 %v3322_v6, %v1172_v50  ;;  %3010 = vmatpush1.bf16.msra.mxu0 %v4074_v0  ;;  %3039 = vmatpush3.bf16.msra.mxu1 %v4110_v59  ;;  %v3324_v34 = vpop.eup %3323  ;;  %v2267_v6 = vld [vmem:[%s3929_s11 + $0x38] sm:$0xff] }
 0x2e4   : > { %3012 = vmatprep.subr.bf16.mxu0 %v4078_v3  ;;  %3040 = vmatprep.subr.bf16.mxu1 %v4749_v16  ;;  %v1221_v42 = vsub.f32 1.0, %v3324_v34  ;;  %v1223_v30 = vmul.f32 %v3324_v34, %v4279_v15  ;;  %v4774_v15 = vld [vmem:[#allocation36_spill] sm:$0xff] }
 0x2e5   : > { %v1219_v9 = vadd.f32 %v2259_v19, %v1218_v52 }
 0x2e7   : > { %3325 = vtanh.f32 %v1219_v9  ;;  %3014 = vmatpush1.bf16.msra.mxu0 %v4089_v27  ;;  %3042 = vmatpush3.bf16.msra.mxu1 %v4129_v40 }
 0x2e8   : > { %3016 = vmatprep.subr.bf16.mxu0 %v4096_v38  ;;  %3043 = vmatprep.subr.bf16.mxu1 %v4749_v16 }
 0x2eb   : > { %3018 = vmatpush1.bf16.msra.mxu0 %v4106_v56  ;;  %3045 = vmatpush3.bf16.msra.mxu1 %v4139_v5 }
 0x2ec   : > { %3020 = vmatprep.subr.bf16.mxu0 %v4108_v58  ;;  %3046 = vmatprep.subr.bf16.mxu1 %v4749_v16 }
 0x2ef   : > { %3022 = vmatpush1.bf16.msra.mxu0 %v4120_v20  ;;  %3048 = vmatpush3.bf16.msra.mxu1 %v4147_v32 }
 0x2f0   : > { %3024 = vmatprep.subr.bf16.mxu0 %v4126_v28  ;;  %3049 = vmatprep.subr.bf16.mxu1 %v4749_v16 }
 0x2f1   : > { %v3326_v7 = vpop.eup %3325 }
 0x2f2   : > { %v1222_v8 = vmul.f32 %v3326_v7, %v1221_v42 }
 0x2f3   : > { %3026 = vmatpush1.bf16.msra.mxu0 %v4133_v55  ;;  %3051 = vmatpush3.bf16.msra.mxu1 %v4154_v22 }
 0x2f4   : > { %v1224_v1 = vadd.f32 %v1223_v30, %v1222_v8  ;;  %3028 = vmatprep.subr.bf16.mxu0 %v4136_v60  ;;  %3052 = vmatprep.subr.bf16.mxu1 %v4749_v16  ;;  %v4775_v30 = vld [vmem:[#allocation38_spill] sm:$0xff] }
 0x2f6   : > { %v1244_v63 = vmul.f32 %v1242_v2, %v1224_v1 }
 0x2f7   : > { %3030 = vmatpush1.bf16.msra.mxu0 %v4143_v21  ;;  %3054 = vmatpush3.bf16.msra.mxu1 %v4162_v49 }
 0x2f8   : > { %2265 = vst [vmem:[%s3952_s19 + $0x10] sm:$0xff] %v1244_v63  ;;  %v4375_v45 = vadd.f32 %v1264_v62, %v1244_v63  ;;  %3056 = vmatprep.subr.bf16.mxu0 %v3956_v4  ;;  %3087 = vmatprep.subr.bf16.mxu1 %v4749_v16  ;;  %v4763_v4 = vld [vmem:[#allocation30_spill] sm:$0xff] }
 0x2fa   : > { %1477 = vmatmul.mubr.f32.vlgmr.msra.gmra.mrb[10].mxu0 %v4375_v45  ;;  %2647 = vmatmul.mubr.f32.vlgmr.msra.gmra.mrb[10].mxu1 %v4375_v45 }
 0x2fb   : > { %3058 = vmatpush1.bf16.msra.mxu0 %v3960_v10  ;;  %3089 = vmatpush3.bf16.msra.mxu1 %v3979_v31  ;;  %v4764_v10 = vld [vmem:[#allocation25_spill] sm:$0xff] }
 0x2fc   : > { %3060 = vmatprep.subr.bf16.mxu0 %v3962_v11  ;;  %3090 = vmatprep.subr.bf16.mxu1 %v4749_v16  ;;  %v4765_v11 = vld [vmem:[#allocation26_spill] sm:$0xff]  ;;  %v4770_v31 = vld [vmem:[#allocation29_spill] sm:$0xff] }
 0x2fd   : > { %1713 = vmatprep.mubr.f32.mxu0 %v4750_v25  ;;  %2681 = vmatprep.mubr.msk.f32.mxu1 %vm3627_vm0, %v4750_v25 }
 0x2ff   : > { %3062 = vmatpush1.bf16.msra.mxu0 %v3968_v17  ;;  %3092 = vmatpush3.bf16.msra.mxu1 %v3988_v39  ;;  %v4766_v17 = vld [vmem:[#allocation33_spill] sm:$0xff]  ;;  %v4773_v39 = vld [vmem:[#allocation32_spill] sm:$0xff] }
 0x300   : > { %3064 = vmatprep.subr.bf16.mxu0 %v3971_v18  ;;  %3093 = vmatprep.subr.bf16.mxu1 %v4749_v16  ;;  %v4767_v18 = vld [vmem:[#allocation27_spill] sm:$0xff] }
 0x303   : > { %3066 = vmatpush1.bf16.msra.mxu0 %v3974_v23  ;;  %3095 = vmatpush3.bf16.msra.mxu1 %v3998_v48  ;;  %v4768_v23 = vld [vmem:[#allocation28_spill] sm:$0xff]  ;;  %v2266_v48 = vld [vmem:[%s3929_s11 + $0x30] sm:$0xff] }
 0x304   : > { %3068 = vmatprep.subr.bf16.mxu0 %v3977_v24  ;;  %3096 = vmatprep.subr.bf16.mxu1 %v4749_v16  ;;  %v4769_v24 = vld [vmem:[#allocation34_spill] sm:$0xff] }
 0x307   : > { %3070 = vmatpush1.bf16.msra.mxu0 %v3982_v33  ;;  %3098 = vmatpush3.bf16.msra.mxu1 %v4008_v57  ;;  %v4771_v33 = vld [vmem:[#allocation31_spill] sm:$0xff] }
 0x308   : > { %3072 = vmatprep.subr.bf16.mxu0 %v3985_v35  ;;  %3099 = vmatprep.subr.bf16.mxu1 %v4749_v16  ;;  %v4772_v35 = vld [vmem:[#allocation35_spill] sm:$0xff] }
 0x30b   : > { %3074 = vmatpush1.bf16.msra.mxu0 %v3992_v43  ;;  %3101 = vmatpush3.bf16.msra.mxu1 %v4763_v4  ;;  %v2271_v4 = vld [vmem:[%s3939_s21 + $0x18] sm:$0xff] }
 0x30c   : > { %3076 = vmatprep.subr.bf16.mxu0 %v4764_v10  ;;  %3102 = vmatprep.subr.bf16.mxu1 %v4749_v16 }
 0x30f   : > { %3078 = vmatpush1.bf16.msra.mxu0 %v4765_v11  ;;  %3104 = vmatpush3.bf16.msra.mxu1 %v4766_v17  ;;  %v4776_v17 = vld [vmem:[#allocation39_spill] sm:$0xff] }
 0x310   : > { %3080 = vmatprep.subr.bf16.mxu0 %v4767_v18  ;;  %3105 = vmatprep.subr.bf16.mxu1 %v4749_v16 }
 0x313   : > { %3082 = vmatpush1.bf16.msra.mxu0 %v4768_v23  ;;  %3107 = vmatpush3.bf16.msra.mxu1 %v4769_v24 }
 0x314   : > { %3084 = vmatprep.subr.bf16.mxu0 %v4770_v31  ;;  %3108 = vmatprep.subr.bf16.mxu1 %v4749_v16 }
 0x317   : > { %3086 = vmatpush1.bf16.msra.mxu0 %v4771_v33  ;;  %3110 = vmatpush3.bf16.msra.mxu1 %v4772_v35  ;;  %v2272_v35 = vld [vmem:[%s3939_s21 + $0x20] sm:$0xff] }
 0x318   : > { %3112 = vmatprep.subr.bf16.mxu0 %v4773_v39  ;;  %3143 = vmatprep.subr.bf16.mxu1 %v4749_v16 }
 0x3ad   : > { %v1337_v43 = vpop.f32.mrb[8].mxu0  ;;  %v1408_v57 = vpop.f32.mrb[8].mxu1 }
 0x3ae   : > { %v1338_v61 = vadd.f32 %v1337_v43, %v4774_v15  ;;  %v1339_v54 = vpop.f32.mrb[9].mxu0  ;;  %v2613_v44 = vpop.f32.mrb[9].mxu1  ;;  %v1409_v1 = vadd.f32 %v1408_v57, %v4775_v30 }
 0x3af   : > { %v1340_v12 = vadd.f32 %v1339_v54, %v4761_v51 }
 0x3b0   : > { %v1557_v50 = vadd.f32 %v2266_v48, %v1338_v61 }
 0x3b1   : > { %v1558_v52 = vadd.f32 %v2267_v6, %v1340_v12 }
 0x3b2   : > { %v2269_v19 = vmul.f32 -1.442695, %v1557_v50 }
 0x3b3   : > { %v2270_v9 = vmul.f32 -1.442695, %v1558_v52  ;;  %v1631_v52 = vpop.permute.xlu1 %1630 }
 0x3b4   : > { %3327 = vpow2.f32 %v2269_v19  ;;  %v1614_v19 = vpop.permute.xlu0 %1613 }
 0x3b5   : > { %3329 = vpow2.f32 %v2270_v9  ;;  %v1633_v9 = vmul.f32 %v1631_v52, %v4333_v53 }
 0x3be   : > { %v3328_v34 = vpop.eup %3327 }
 0x3bf   : > { %v1565_v42 = vadd.f32 1.0, %v3328_v34  ;;  %v3330_v7 = vpop.eup %3329 }
 0x3c0   : > { %v1566_v8 = vadd.f32 1.0, %v3330_v7 }
 0x3c1   : > { %3331 = vrcp.f32 %v1565_v42 }
 0x3c2   : > { %3333 = vrcp.f32 %v1566_v8 }
 0x3cb   : > { %v3332_v2 = vpop.eup %3331 }
 0x3cc   : > { %v1571_v62 = vmul.f32 %v3332_v2, %v1409_v1  ;;  %v3334_v48 = vpop.eup %3333 }
 0x3cd   : > { %v1478_v63 = vpop.f32.mrb[10].mxu0  ;;  %v1549_v10 = vpop.f32.mrb[10].mxu1  ;;  %v1574_v61 = vsub.f32 1.0, %v3334_v48  ;;  %v1576_v12 = vmul.f32 %v3334_v48, %v4333_v53 }
 0x3ce   : > { %v1572_v11 = vadd.f32 %v2268_v36, %v1571_v62  ;;  %v1479_v18 = vadd.f32 %v1478_v63, %v4776_v17  ;;  %v1480_v23 = vpop.f32.mrb[11].mxu0  ;;  %v2648_v24 = vpop.f32.mrb[11].mxu1 }
 0x3cf   : > { %v1481_v31 = vadd.f32 %v1480_v23, %v4226_v37  ;;  %v1956_v23 = vld [vmem:[%s3939_s21] sm:$0xff] }
 0x3d0   : > { %3335 = vtanh.f32 %v1572_v11  ;;  %v1582_v33 = vadd.f32 %v2271_v4, %v1479_v18  ;;  %v2282_v11 = vld [vmem:[%s3929_s11 + $0x58] sm:$0xff] }
 0x3d1   : > { %v1583_v43 = vadd.f32 %v2272_v35, %v1481_v31 }
 0x3d2   : > { %v2274_v39 = vmul.f32 -1.442695, %v1582_v33 }
 0x3d3   : > { %v2275_v57 = vmul.f32 -1.442695, %v1583_v43 }
 0x3d4   : > { %3337 = vpow2.f32 %v2274_v39 }
 0x3d5   : > { %3339 = vpow2.f32 %v2275_v57  ;;  %v1957_v57 = vld [vmem:[%s3939_s21 + $0x8] sm:$0xff] }
 0x3da   : > { %v3336_v54 = vpop.eup %3335 }
 0x3db   : > { %v1575_v44 = vmul.f32 %v3336_v54, %v1574_v61 }
 0x3dd   : > { %v1577_v50 = vadd.f32 %v1576_v12, %v1575_v44 }
 0x3de   : > { %v3338_v6 = vpop.eup %3337 }
 0x3df   : > { %v1616_v34 = vmul.f32 %v1614_v19, %v1577_v50  ;;  %v1590_v42 = vadd.f32 1.0, %v3338_v6  ;;  %v3340_v8 = vpop.eup %3339 }
 0x3e0   : > { %v1591_v53 = vadd.f32 1.0, %v3340_v8 }
 0x3e1   : > { %2278 = vst [vmem:[%s3950_s17 + $0x10] sm:$0xff] %v1616_v34  ;;  %v4429_v7 = vadd.f32 %v1633_v9, %v1616_v34  ;;  %3341 = vrcp.f32 %v1590_v42 }
 0x3e2   : > { %3343 = vrcp.f32 %v1591_v53 }
 0x3e3   : > { %1714 = vmatmul.mubr.f32.vlgmr.msra.gmra.mrb[12].mxu0 %v4429_v7  ;;  %2682 = vmatmul.mubr.f32.vlgmr.msra.gmra.mrb[12].mxu1 %v4429_v7 }
 0x3e4   : > { %3114 = vmatpush1.bf16.msra.mxu0 %v4040_v26  ;;  %3145 = vmatpush3.bf16.msra.mxu1 %v4081_v14  ;;  %v1550_v26 = vadd.f32 %v1549_v10, %v4239_v13 }
 0x3e5   : > { %3116 = vmatprep.subr.bf16.mxu0 %v4048_v29  ;;  %3146 = vmatprep.subr.bf16.mxu1 %v4749_v16  ;;  %v2273_v29 = vld [vmem:[%s3939_s21 + $0x28] sm:$0xff] }
 0x3e6   : > { %1854 = vmatprep.mubr.f32.mxu0 %v4750_v25  ;;  %2716 = vmatprep.mubr.msk.f32.mxu1 %vm3627_vm0, %v4750_v25  ;;  %v2281_v25 = vld [vmem:[%s3929_s11 + $0x50] sm:$0xff] }
 0x3e8   : > { %3118 = vmatpush1.bf16.msra.mxu0 %v4059_v46  ;;  %3148 = vmatpush3.bf16.msra.mxu1 %v4099_v41 }
 0x3e9   : > { %3120 = vmatprep.subr.bf16.mxu0 %v4061_v47  ;;  %3149 = vmatprep.subr.bf16.mxu1 %v4749_v16 }
 0x3eb   : > { %v3342_v14 = vpop.eup %3341 }
 0x3ec   : > { %v1596_v1 = vmul.f32 %v3342_v14, %v1550_v26  ;;  %3122 = vmatpush1.bf16.msra.mxu0 %v4074_v0  ;;  %3151 = vmatpush3.bf16.msra.mxu1 %v4110_v59  ;;  %v3344_v47 = vpop.eup %3343 }
 0x3ed   : > { %3124 = vmatprep.subr.bf16.mxu0 %v4078_v3  ;;  %3152 = vmatprep.subr.bf16.mxu1 %v4749_v16  ;;  %v1599_v0 = vsub.f32 1.0, %v3344_v47 }
 0x3ee   : > { %v1597_v46 = vadd.f32 %v2273_v29, %v1596_v1 }
 0x3f0   : > { %3345 = vtanh.f32 %v1597_v46  ;;  %3126 = vmatpush1.bf16.msra.mxu0 %v4089_v27  ;;  %3154 = vmatpush3.bf16.msra.mxu1 %v4129_v40 }
 0x3f1   : > { %3128 = vmatprep.subr.bf16.mxu0 %v4096_v38  ;;  %3155 = vmatprep.subr.bf16.mxu1 %v4749_v16  ;;  %v1601_v38 = vmul.f32 %v3344_v47, %v4375_v45  ;;  %v1958_v47 = vld [vmem:[%s3939_s21 + $0x10] sm:$0xff] }
 0x3f4   : > { %3130 = vmatpush1.bf16.msra.mxu0 %v4106_v56  ;;  %3157 = vmatpush3.bf16.msra.mxu1 %v4139_v5  ;;  %v1620_v56 = vpop.permute.xlu0 %1619 }
 0x3f5   : > { %3132 = vmatprep.subr.bf16.mxu0 %v4108_v58  ;;  %3158 = vmatprep.subr.bf16.mxu1 %v4749_v16  ;;  %v1640_v58 = vpop.permute.xlu1 %1639 }
 0x3f6   : > { %v1642_v59 = vmul.f32 %v1640_v58, %v4375_v45 }
 0x3f8   : > { %3134 = vmatpush1.bf16.msra.mxu0 %v4120_v20  ;;  %3160 = vmatpush3.bf16.msra.mxu1 %v4147_v32 }
 0x3f9   : > { %3136 = vmatprep.subr.bf16.mxu0 %v4126_v28  ;;  %3161 = vmatprep.subr.bf16.mxu1 %v4749_v16  ;;  %v2007_v34 = vpop.permute.xlu1 %2006 }
 0x3fa   : > { %v3346_v3 = vpop.eup %3345  ;;  %v2009_v42 = vmul.f32 %v2007_v34, %v4429_v7 }
 0x3fb   : > { %v1600_v27 = vmul.f32 %v3346_v3, %v1599_v0 }
 0x3fc   : > { %3138 = vmatpush1.bf16.msra.mxu0 %v4133_v55  ;;  %3163 = vmatpush3.bf16.msra.mxu1 %v4154_v22  ;;  %v2280_v55 = vld [vmem:[%s3929_s11 + $0x48] sm:$0xff] }
 0x3fd   : > { %v1602_v41 = vadd.f32 %v1601_v38, %v1600_v27  ;;  %3140 = vmatprep.subr.bf16.mxu0 %v4136_v60  ;;  %3164 = vmatprep.subr.bf16.mxu1 %v4749_v16 }
 0x3ff   : > { %v1622_v20 = vmul.f32 %v1620_v56, %v1602_v41 }
 0x400   : > { %3142 = vmatpush1.bf16.msra.mxu0 %v4143_v21  ;;  %3166 = vmatpush3.bf16.msra.mxu1 %v4162_v49 }
 0x401   : > { %2279 = vst [vmem:[%s3952_s19 + $0x8] sm:$0xff] %v1622_v20  ;;  %v4471_v28 = vadd.f32 %v1642_v59, %v1622_v20 }
 0x403   : > { %1855 = vmatmul.mubr.f32.vlgmr.msra.gmra.mrb[14].mxu0 %v4471_v28  ;;  %2717 = vmatmul.mubr.f32.vlgmr.msra.gmra.mrb[14].mxu1 %v4471_v28 }
 0x4b6   : > { %v1715_v40 = vpop.f32.mrb[12].mxu0  ;;  %v1786_v60 = vpop.f32.mrb[12].mxu1 }
 0x4b7   : > { %v1716_v5 = vadd.f32 %v1715_v40, %v4774_v15  ;;  %v1717_v32 = vpop.f32.mrb[13].mxu0  ;;  %v2683_v22 = vpop.f32.mrb[13].mxu1  ;;  %v1787_v15 = vadd.f32 %v1786_v60, %v4775_v30 }
 0x4b8   : > { %v1718_v16 = vadd.f32 %v1717_v32, %v4761_v51 }
 0x4b9   : > { %v1935_v21 = vadd.f32 %v2280_v55, %v1716_v5 }
 0x4ba   : > { %v1936_v45 = vadd.f32 %v2281_v25, %v1718_v16 }
 0x4bb   : > { %v2283_v49 = vmul.f32 -1.442695, %v1935_v21 }
 0x4bc   : > { %v2284_v2 = vmul.f32 -1.442695, %v1936_v45 }
 0x4bd   : > { %3347 = vpow2.f32 %v2283_v49 }
 0x4be   : > { %3349 = vpow2.f32 %v2284_v2 }
 0x4c7   : > { %v3348_v36 = vpop.eup %3347 }
 0x4c8   : > { %v1943_v62 = vadd.f32 1.0, %v3348_v36  ;;  %v3350_v63 = vpop.eup %3349 }
 0x4c9   : > { %v1944_v4 = vadd.f32 1.0, %v3350_v63 }
 0x4ca   : > { %3351 = vrcp.f32 %v1943_v62 }
 0x4cb   : > { %3353 = vrcp.f32 %v1944_v4 }
 0x4d4   : > { %v3352_v10 = vpop.eup %3351 }
 0x4d5   : > { %v1949_v18 = vmul.f32 %v3352_v10, %v1787_v15  ;;  %v3354_v30 = vpop.eup %3353 }
 0x4d6   : > { %v1856_v51 = vpop.f32.mrb[14].mxu0  ;;  %v1927_v24 = vpop.f32.mrb[14].mxu1  ;;  %v1952_v12 = vsub.f32 1.0, %v3354_v30  ;;  %v1954_v19 = vmul.f32 %v3354_v30, %v4429_v7 }
 0x4d7   : > { %v1950_v31 = vadd.f32 %v2282_v11, %v1949_v18  ;;  %v1857_v33 = vadd.f32 %v1856_v51, %v4776_v17  ;;  %v1858_v35 = vpop.f32.mrb[15].mxu0  ;;  %v2718_v39 = vpop.f32.mrb[15].mxu1  ;;  %v1928_v1 = vadd.f32 %v1927_v24, %v4239_v13 }
 0x4d8   : > { %v1859_v43 = vadd.f32 %v1858_v35, %v4226_v37  ;;  %v3284_v17 = vpop.permute.xlu0 %3283 }
 0x4d9   : > { %3355 = vtanh.f32 %v1950_v31  ;;  %v1959_v48 = vadd.f32 %v1956_v23, %v1857_v33  ;;  %v3285_v52 = vunpack.i.l.bf16 %v3284_v17  ;;  %v3286_v58 = vunpack.i.h.bf16 %v3284_v17 }
 0x4da   : > { %v1960_v54 = vadd.f32 %v1957_v57, %v1859_v43 }
 0x4db   : > { %v2285_v61 = vmul.f32 -1.442695, %v1959_v48 }
 0x4dc   : > { %v2286_v44 = vmul.f32 -1.442695, %v1960_v54  ;;  %v2016_v20 = vpop.permute.xlu0 %2015 }
 0x4dd   : > { %3357 = vpow2.f32 %v2285_v61  ;;  %v2018_v40 = vmul.f32 %v2016_v20, %v4471_v28 }
 0x4de   : > { %3359 = vpow2.f32 %v2286_v44 }
 0x4e3   : > { %v3356_v50 = vpop.eup %3355 }
 0x4e4   : > { %v1953_v6 = vmul.f32 %v3356_v50, %v1952_v12 }
 0x4e6   : > { %v1955_v9 = vadd.f32 %v1954_v19, %v1953_v6 }
 0x4e7   : > { %v3358_v37 = vpop.eup %3357 }
 0x4e8   : > { %v1993_v8 = vmul.f32 %v3285_v52, %v1955_v9  ;;  %v1967_v53 = vadd.f32 1.0, %v3358_v37  ;;  %v3360_v14 = vpop.eup %3359 }
 0x4e9   : > { %v1968_v29 = vadd.f32 1.0, %v3360_v14 }
 0x4ea   : > { %2289 = vst [vmem:[%s3950_s17 + $0x18] sm:$0xff] %v1993_v8  ;;  %v2010_v26 = vadd.f32 %v2009_v42, %v1993_v8  ;;  %3361 = vrcp.f32 %v1967_v53 }
 0x4eb   : > { %3363 = vrcp.f32 %v1968_v29 }
 0x4ec   : > { %2011 = vst [vmem:[#allocation2] sm:$0xff] %v2010_v26 }
 0x4f3   : > { %v2025_v60 = vld [vmem:[#allocation2] sm:$0xff] (!%p2290_p9) }
 0x4f4   : > { %v3362_v46 = vpop.eup %3361  ;;  %2027 = vst [vmem:[#allocation12] sm:$0xff] (!%p2290_p9), %v2025_v60 }
 0x4f5   : > { %v1973_v0 = vmul.f32 %v3362_v46, %v1928_v1  ;;  %v3364_v27 = vpop.eup %3363 }
 0x4f6   : > { %v1976_v38 = vsub.f32 1.0, %v3364_v27  ;;  %v1978_v56 = vmul.f32 %v3364_v27, %v4471_v28 }
 0x4f7   : > { %v1974_v3 = vadd.f32 %v1973_v0, %v1958_v47 }
 0x4f9   : > { %3365 = vtanh.f32 %v1974_v3 }
 0x503   : > { %v3366_v7 = vpop.eup %3365 }
 0x504   : > { %v1977_v41 = vmul.f32 %v3366_v7, %v1976_v38 }
 0x506   : > { %v1979_v59 = vadd.f32 %v1978_v56, %v1977_v41  ;;  %2024 = sbr.rel (%p2290_p9) target bundleno = 1301 (0x515), region = 60 }
 0x508   : > { %v1999_v55 = vmul.f32 %v3286_v58, %v1979_v59 }
 0x50a   : > { %2002 = vst [vmem:[%s3952_s19] sm:$0xff] %v1999_v55  ;;  %v2019_v13 = vadd.f32 %v2018_v40, %v1999_v55 }
 0x50c   : > { %2020 = vst [vmem:[#allocation2 + $0x8] sm:$0xff] %v2019_v13 }
 0x513   : > { %v2026_v5 = vld [vmem:[#allocation2 + $0x8] sm:$0xff] }
 0x514   : > { %2028 = vst [vmem:[#allocation12 + $0x8] sm:$0xff] %v2026_v5 }
 0x515 PF: > { %s4777_s11 = sld [smem:[#allocation20_spill]]  ;;  %s2058_s21 = ssub.s32 1, %s3708_s8 }
 0x516   : > { %s2302_s12 = sshll.u32 %s2058_s21, 9  ;;  %s2065_s7 = sshll.u32 %s3952_s19, 4  ;;  %s4501_s7 = int_to_ptr.vmem [resolvable:$true] %s2065_s7 }
 0x517   : > { %s4778_s9 = sld [smem:[#allocation43_spill]]  ;;  %s4505_s18 = scalar_lea.sflag [#allocation11], %s318_s16 }
 0x518   : > { %s3456_s6 = scalar_lea.vmem %s4501_s7, 512  ;;  %s3629_s3 = smov [#allocation10]  }
 0x519   : > { %p3457_p12 = scmp.ne.s32.totalorder %s4501_s7, %s3456_s6  ;;  %s3460_s19 = sshll.u32 %s3629_s3, 4  ;;  %s3461_s19 = int_to_ptr.vmem [resolvable:$false] %s3460_s19 }
 0x51a   : > { %s3462_s20 = scalar_lea.vmem %s3461_s19, 1024  ;;  %p3463_p4 = scmp.lt.s32.totalorder %s4501_s7, %s3461_s19 }
 0x51b   : > { %p4779_p0 = scmp.ne.s32.totalorder %s4777_s11, 0  ;;  %p3464_p11 = scmp.lt.s32.totalorder %s3462_s20, %s3456_s6 }
 0x51d   : > { %s4499_s15 = scalar_lea.hbm %s4778_s9, %s2302_s12  ;;  %p3458_p8 = pnand %p3457_p12, %p4779_p0 }
 0x51e   : > { %p3465_p6 = por %p3464_p11, %p3463_p4 }
 0x51f   : > { %p3459_p3 = pneg %p3458_p8 }
 0x521   : > { %p3466_p10 = pnand %p3465_p6, %p3459_p3 }
 0x523   : > { %3469 = shalt.err (!%p3466_p10)
}
 0x524   : > { %s3470_s16 = scalar_lea.hbm %s4499_s15, 512  ;;  %s3474_s10 = scalar_lea.hbm %s4778_s9, 1024 }
 0x525   : > { %p3471_p5 = scmp.ne.s32.totalorder %s4499_s15, %s3470_s16  ;;  %p3475_p2 = scmp.lt.u32.totalorder %s4499_s15, %s4778_s9 }
 0x526   : > { %p3476_p9 = scmp.lt.u32.totalorder %s3474_s10, %s3470_s16  ;;  %p3478_p8 = scmp.lt.u32.totalorder %s3470_s16, %s4499_s15 }
 0x527   : > { %p3472_p1 = pnand %p3471_p5, %p4779_p0 }
 0x528   : > { %p3477_p12 = por %p3476_p9, %p3475_p2 }
 0x529   : > { %p3473_p7 = pneg %p3472_p1 }
 0x52a   : > { %p3479_p3 = por %p3478_p8, %p3477_p12 }
 0x52c   : > { %p3480_p4 = pnand %p3479_p3, %p3473_p7 }
 0x52e   : > { %3483 = shalt.err (!%p3480_p4)
}
 0x52f   : > { %s3630_s12 = smov 128   ;;  %s3631_s23 = smov 8  }
 0x530   : > { %3181 = dma.vmem_to_hbm [thread:$0]  (%p4779_p0), %s4501_s7, 512, %s4499_s15, %s4505_s18, %s3630_s12, %s3630_s12, %s3631_s23  }
 0x531   : > { %s2301_s6 = sshll.u32 %s3708_s8, 9  ;;  %s4781_s20 = sld [smem:[#allocation42_spill]] }
 0x532   : > { %s2048_s27 = sshll.u32 %s3950_s17, 4  ;;  %s2030_s14 = scalar_lea.sflag [#allocation5], %s3925_s22  ;;  %s4539_s27 = int_to_ptr.vmem [resolvable:$true] %s2048_s27 }
 0x533   : > { %s3484_s10 = scalar_lea.vmem %s4539_s27, 512  ;;  %s3632_s11 = smov [#allocation9]  }
 0x534   : > { %p3485_p11 = scmp.ne.s32.totalorder %s4539_s27, %s3484_s10  ;;  %s3488_s7 = sshll.u32 %s3632_s11, 4  ;;  %s3489_s7 = int_to_ptr.vmem [resolvable:$false] %s3488_s7 }
 0x535   : > { %s3490_s15 = scalar_lea.vmem %s3489_s7, 1024  ;;  %p3491_p0 = scmp.lt.s32.totalorder %s4539_s27, %s3489_s7 }
 0x536   : > { %p3486_p6 = pnand %p3485_p11, %p3817_p13  ;;  %p3492_p5 = scmp.lt.s32.totalorder %s3490_s15, %s3484_s10 }
 0x537   : > { %s4536_s16 = scalar_lea.hbm %s4781_s20, %s2301_s6 }
 0x538   : > { %p3487_p10 = pneg %p3486_p6  ;;  %p3493_p1 = por %p3492_p5, %p3491_p0 }
 0x53a   : > { %p3494_p7 = pnand %p3493_p1, %p3487_p10 }
 0x53c   : > { %3497 = shalt.err (!%p3494_p7)
}
 0x53d   : > { %s3498_s17 = scalar_lea.hbm %s4536_s16, 512  ;;  %s3502_s21 = scalar_lea.hbm %s4781_s20, 1024 }
 0x53e   : > { %p3499_p2 = scmp.ne.s32.totalorder %s4536_s16, %s3498_s17  ;;  %p3503_p8 = scmp.lt.u32.totalorder %s4536_s16, %s4781_s20 }
 0x53f   : > { %p3504_p3 = scmp.lt.u32.totalorder %s3502_s21, %s3498_s17  ;;  %p3506_p11 = scmp.lt.u32.totalorder %s3498_s17, %s4536_s16 }
 0x540   : > { %p3500_p9 = pnand %p3499_p2, %p3817_p13 }
 0x541   : > { %p3505_p4 = por %p3504_p3, %p3503_p8 }
 0x542   : > { %p3501_p12 = pneg %p3500_p9 }
 0x543   : > { %p3507_p6 = por %p3506_p11, %p3505_p4 }
 0x545   : > { %p3508_p10 = pnand %p3507_p6, %p3501_p12 }
 0x547   : > { %3511 = shalt.err (!%p3508_p10)
}
 0x548   : > { %3180 = dma.vmem_to_hbm [thread:$0]  (%p3817_p13), %s4539_s27, 512, %s4536_s16, %s2030_s14, %s3630_s12, %s3630_s12, %s3631_s23  }
 0x549   : > { %s3633_s19 = smov [#allocation12]   ;;  %p4782_p5 = scmp.eq.s32.totalorder %s3708_s8, 1 }
 0x54a   : > { %s2078_s10 = sshll.u32 %s3633_s19, 4  ;;  %s2079_s10 = int_to_ptr.vmem [resolvable:$true] %s2078_s10 }
 0x54b   : > { %s3512_s11 = scalar_lea.vmem %s2079_s10, 256  ;;  %p3519_p2 = scmp.lt.s32.totalorder %s2079_s10, %s2079_s10 }
 0x54c   : > { %p3513_p0 = scmp.ne.s32.totalorder %s2079_s10, %s3512_s11  ;;  %p3520_p9 = scmp.lt.s32.totalorder %s3512_s11, %s3512_s11 }
 0x54e   : > { %p3514_p1 = pnand %p3513_p0, %p4782_p5  ;;  %p3521_p12 = por %p3520_p9, %p3519_p2 }
 0x550   : > { %p3515_p7 = pneg %p3514_p1 }
 0x552   : > { %p3522_p8 = pnand %p3521_p12, %p3515_p7 }
 0x554   : > { %3525 = shalt.err (!%p3522_p8)
}
 0x555   : > { %s4783_s22 = sld [smem:[#allocation44_spill]]  ;;  %p4784_p3 = pmov %p4782_p5 }
 0x55b   : > { %s3526_s15 = scalar_lea.hbm %s4783_s22, 256 }
 0x55c   : > { %p3527_p13 = scmp.ne.s32.totalorder %s4783_s22, %s3526_s15  ;;  %p3532_p6 = scmp.lt.u32.totalorder %s3526_s15, %s4783_s22 }
 0x55e   : > { %p3528_p4 = pnand %p3527_p13, %p4784_p3 }
 0x560   : > { %p3529_p11 = pneg %p3528_p4 }
 0x562   : > { %p3534_p10 = pnand %p3532_p6, %p3529_p11 }
 0x564   : > { %3537 = shalt.err (!%p3534_p10)
}
 0x565   : > { %p4785_p0 = pmov %p4784_p3 }
 0x567   : > { %3183 = dma.vmem_to_hbm [thread:$0]  (%p4785_p0), %s2079_s10, 256, %s4783_s22, [#allocation11], %s3630_s12, %s3630_s12, %s3631_s23  }
 0x568   : > { %p4786_p5 = pmov %p4785_p0 }
 0x569   : > { %p4787_p1 = pmov %p4785_p0 }
 0x56a   : > { %3579 = dma.done.wait (%p4786_p5), [#allocation11], 256  }
 0x56b   : > { %3581 = vsyncadd (%p4787_p1), [#allocation11], 4294967040 }
 0x56c PF: > { %s4788_s21 = sld [smem:[#allocation19_spill]]  ;;  %s4789_s6 = sld [smem:[#allocation21_spill]] }
 0x56d   : > { %p4791_p2 = scmp.ge.s32.totalorder %s3616_s30, 2 }
 0x572   : > { %s2097_s3 = sand.u32 1, %s4788_s21   ;;  %p4790_p7 = scmp.ne.s32.totalorder %s4789_s6, 0 }
 0x573   : > { %s2098_s19 = scalar_lea.sflag [#allocation5], %s2097_s3 }
 0x574   : > { %p3200_p9 = pnand %p4791_p2, %p4790_p7 }
 0x576   : > { %3583 = dma.done.wait (!%p3200_p9), %s2098_s19, 512  }
 0x577   : > { %3585 = vsyncadd (!%p3200_p9), %s2098_s19, 4294966784  ;;  %s4792_s11 = sadd.s32 4294967294, %s3616_s30   ;;  %s4793_s13 = sld [smem:[#allocation22_spill]] }
 0x578   : > { %s2106_s12 = sand.u32 1, %s4792_s11   ;;  %p4795_p8 = pmov %p4791_p2 }
 0x579   : > { %s2107_s8 = scalar_lea.sflag [#allocation11], %s2106_s12 }
 0x57d   : > { %p4794_p12 = scmp.ne.s32.totalorder %s4793_s13, 0 }
 0x57f   : > { %p3203_p13 = pnand %p4795_p8, %p4794_p12 }
 0x581   : > { %3587 = dma.done.wait (!%p3203_p13), %s2107_s8, 512  }
 0x582   : > { %3589 = vsyncadd (!%p3203_p13), %s2107_s8, 4294966784  ;;  %s4796_s30 = sld [smem:[#allocation24_spill]]  ;;  %s4797_s24 = smov %s3596_s25 }
 0x583   : > { %s4798_s25 = smov %s3600_s26  ;;  %s4799_s26 = smov %s3881_s5 }
 0x584   : > { %s4800_s27 = smov %s3608_s28  ;;  %s4801_s28 = smov %s3612_s29 }
 0x585   : > { %s4802_s29 = smov %s3878_s0 }
 0x588   : > { %p27_p3 = scmp.ge.s32.totalorder %s4796_s30, 4  }
 0x58a   :  { %29 = sbr.rel (!%p27_p3) target bundleno = 17 (0x11), region = 150 }
 0x591   :  { %2112 = vsyncpa [#allocation4], 1 }
 0x592   :  { %2114 = vsyncpa [#allocation4 + $0x1], 1 }
 0x593   :  { %2115 = vsyncpa [#allocation7], 1 }
 0x594   :  { %2117 = vsyncpa [#allocation7 + $0x1], 1 }
 0x595   :  { %2118 = vsyncpa [#allocation5], 1 }
 0x596   :  { %2120 = vsyncpa [#allocation5 + $0x1], 1 }
 0x597   :  { %2121 = vsyncpa [#allocation11], 1 }
 0x598   :  { %2123 = vsyncpa [#allocation11 + $0x1], 1 }

</bundles_post_ra>
